<compile_context>
chip_gen: v6e
topology: v6e:2x2x1
jax: 0.10.0
libtpu: 0.0.40
codegen_flags: <defaults>
</compile_context>

<pallas_src>
import functools
import math

import jax
import jax.numpy as jnp
from jax import lax
from jax.experimental import pallas as pl
from jax.experimental.pallas import tpu as pltpu


def _atan(x):
    """Elementwise arctan (cephes atanf-style range reduction + poly, f32-accurate)."""
    sign = jnp.where(x < 0, -1.0, jnp.where(x > 0, 1.0, 0.0)).astype(jnp.float32)
    ax = jnp.abs(x)
    tan3pi8 = jnp.float32(2.414213562373095)
    tanpi8 = jnp.float32(0.4142135623730950)
    big = ax > tan3pi8
    mid = (ax > tanpi8) & jnp.logical_not(big)
    x_big = -1.0 / jnp.where(big, ax, 1.0)
    x_mid = (ax - 1.0) / (ax + 1.0)
    xr = jnp.where(big, x_big, jnp.where(mid, x_mid, ax))
    off = jnp.where(big, jnp.float32(math.pi / 2),
                    jnp.where(mid, jnp.float32(math.pi / 4), jnp.float32(0.0)))
    z = xr * xr
    p = (((jnp.float32(8.05374449538e-2) * z
           - jnp.float32(1.38776856032e-1)) * z
          + jnp.float32(1.99777106478e-1)) * z
         - jnp.float32(3.33329491539e-1)) * z * xr + xr
    return sign * (off + p)


def _bbox_loss_kernel(*refs, reg_max, use_dfl):
    if use_dfl:
        pb_ref, tb_ref, an_ref, wt_ref, pd_ref, iou_out_ref, dfl_out_ref = refs
    else:
        pb_ref, tb_ref, an_ref, wt_ref, iou_out_ref, dfl_out_ref = refs
        pd_ref = None

    eps = jnp.float32(1e-7)

    pb = pb_ref[...]            # (4, TM)  pred boxes, xyxy, lane-major
    tb = tb_ref[...]            # (4, TM)  target boxes, xyxy, lane-major
    wt = wt_ref[...]            # (1, TM)  fg_mask * target_scores.sum(-1)

    b1_x1, b1_y1, b1_x2, b1_y2 = pb[0:1], pb[1:2], pb[2:3], pb[3:4]
    b2_x1, b2_y1, b2_x2, b2_y2 = tb[0:1], tb[1:2], tb[2:3], tb[3:4]
    mn = jnp.minimum(pb, tb)    # (4, TM)
    mx = jnp.maximum(pb, tb)    # (4, TM)

    w1 = b1_x2 - b1_x1
    h1 = b1_y2 - b1_y1 + eps
    w2 = b2_x2 - b2_x1
    h2 = b2_y2 - b2_y1 + eps

    # CIoU (bbox_iou, xywh=False, CIoU=True)
    inter = (jnp.maximum(mn[2:3] - mx[0:1], 0.0) *
             jnp.maximum(mn[3:4] - mx[1:2], 0.0))
    union = w1 * h1 + w2 * h2 - inter + eps
    iou = inter / union
    cw = mx[2:3] - mn[0:1]
    ch = mx[3:4] - mn[1:2]
    c2 = cw * cw + ch * ch + eps
    dx = (b2_x1 + b2_x2) - (b1_x1 + b1_x2)
    dy = (b2_y1 + b2_y2) - (b1_y1 + b1_y2)
    rho2 = (dx * dx + dy * dy) * jnp.float32(0.25)
    # aspect-ratio terms / alpha: approx reciprocal runs on the EUP slot
    ar2 = w2 * pl.reciprocal(h2, approx=True)
    ar1 = w1 * pl.reciprocal(h1, approx=True)
    v = jnp.float32(4.0 / math.pi ** 2) * (_atan(ar2) - _atan(ar1)) ** 2
    alpha = v * pl.reciprocal(v - iou + (1.0 + eps), approx=True)
    ciou = iou - (rho2 / c2 + v * alpha)

    iou_part = jnp.sum(wt * (1.0 - ciou), axis=1, keepdims=True)   # (1, 1)

    if use_dfl:
        an = an_ref[...]        # (2, TM) anchor points, lane-major
        ax_, ay_ = an[0:1], an[1:2]
        r1 = pd_ref.shape[1]
        tm = pd_ref.shape[2]
        tmax = jnp.float32(reg_max - 0.01)
        sides = (ax_ - b2_x1, ay_ - b2_y1, b2_x2 - ax_, b2_y2 - ay_)   # bbox2dist ltrb
        iota = lax.broadcasted_iota(jnp.int32, (r1, tm), 0)
        dfl_acc = jnp.zeros_like(wt)
        for s in range(4):
            t = jnp.clip(sides[s], 0.0, tmax)                  # (1, TM)
            logits = pd_ref[s]                                 # (r1, TM), aligned slab
            mmax = jnp.max(logits, axis=0, keepdims=True)
            lse = mmax + jnp.log(jnp.sum(jnp.exp(logits - mmax), axis=0, keepdims=True))
            tl = jnp.floor(t)
            tl_i = tl.astype(jnp.int32)
            tr_i = tl_i + 1
            wl = (tl + 1.0) - t
            wr = 1.0 - wl
            logit_l = jnp.sum(jnp.where(iota == tl_i, logits, 0.0), axis=0, keepdims=True)
            logit_r = jnp.sum(jnp.where(iota == tr_i, logits, 0.0), axis=0, keepdims=True)
            dfl_acc = dfl_acc + (lse - logit_l) * wl + (lse - logit_r) * wr
        dfl_part = jnp.sum(wt * dfl_acc, axis=1, keepdims=True) * jnp.float32(0.25)
    else:
        dfl_part = jnp.zeros((1, 1), jnp.float32)

    # Lane-dense per-block partial outputs; the cross-block sum is done in XLA,
    # so the grid axis can be "parallel" (uses both TensorCores on v7x).
    iou_out_ref[...] = jnp.broadcast_to(iou_part.reshape(1, 1, 1), iou_out_ref.shape)
    dfl_out_ref[...] = jnp.broadcast_to(dfl_part.reshape(1, 1, 1), dfl_out_ref.shape)


def bbox_loss(pred_dist, pred_bboxes, anchor_points, target_bboxes,
              target_scores, target_scores_sum, fg_mask, *, reg_max,
              use_dfl=True, tile_m=2048):
    B, N, _ = pred_bboxes.shape
    r1 = reg_max + 1
    M = B * N

    assert tile_m % 128 == 0, "tile_m must be a multiple of the 128-lane tile"
    tile_m = min(tile_m, pl.cdiv(M, 128) * 128)
    m_pad = pl.cdiv(M, tile_m) * tile_m
    grid = m_pad // tile_m

    def prep_cm(x, channels):
        # (..., channels) per-anchor features -> lane-major (channels, m_pad)
        x = jnp.asarray(x, jnp.float32).reshape(M, channels).T
        return jnp.pad(x, ((0, 0), (0, m_pad - M)))

    pb = prep_cm(pred_bboxes, 4)
    tb = prep_cm(target_bboxes, 4)
    an = prep_cm(jnp.broadcast_to(anchor_points[None], (B, N, 2)), 2)
    # Pre-reduce scores and fold the fg mask: 1 float/anchor instead of nc + 1.
    wt = prep_cm((jnp.asarray(target_scores, jnp.float32).sum(-1)
                  * jnp.asarray(fg_mask, jnp.float32))[..., None], 1)

    args = [pb, tb, an, wt]
    in_specs = [
        pl.BlockSpec((4, tile_m), lambda i: (0, i)),
        pl.BlockSpec((4, tile_m), lambda i: (0, i)),
        pl.BlockSpec((2, tile_m), lambda i: (0, i)),
        pl.BlockSpec((1, tile_m), lambda i: (0, i)),
    ]
    if use_dfl:
        pd = jnp.asarray(pred_dist, jnp.float32).reshape(M, 4, r1).transpose(1, 2, 0)
        pd = jnp.pad(pd, ((0, 0), (0, 0), (0, m_pad - M)))     # (4, r1, m_pad)
        args.append(pd)
        in_specs.append(pl.BlockSpec((4, r1, tile_m), lambda i: (0, 0, i)))

    kernel = functools.partial(_bbox_loss_kernel, reg_max=reg_max, use_dfl=use_dfl)
    iou_parts, dfl_parts = pl.pallas_call(
        kernel,
        out_shape=(jax.ShapeDtypeStruct((grid, 1, 128), jnp.float32),
                   jax.ShapeDtypeStruct((grid, 1, 128), jnp.float32)),
        grid_spec=pltpu.PrefetchScalarGridSpec(
            num_scalar_prefetch=0,
            grid=(grid,),
            in_specs=in_specs,
            out_specs=(pl.BlockSpec((1, 1, 128), lambda i: (i, 0, 0)),
                       pl.BlockSpec((1, 1, 128), lambda i: (i, 0, 0))),
        ),
        compiler_params=pltpu.CompilerParams(
            dimension_semantics=("parallel",)),
    )(*args)

    loss_iou = jnp.sum(iou_parts[:, 0, 0]) / target_scores_sum
    if use_dfl:
        loss_dfl = jnp.sum(dfl_parts[:, 0, 0]) / target_scores_sum
    else:
        loss_dfl = jnp.float32(0.0)
    return loss_iou, loss_dfl


def _reference(pred_dist, pred_bboxes, anchor_points, target_bboxes,
               target_scores, target_scores_sum, fg_mask, reg_max, use_dfl):
    """Pure-JAX reference mirroring the PyTorch module."""
    eps = 1e-7
    B, N, _ = pred_bboxes.shape
    r1 = reg_max + 1
    mask = fg_mask.astype(jnp.float32)[..., None]
    weight = target_scores.sum(-1, keepdims=True)
    b1x1, b1y1, b1x2, b1y2 = jnp.split(pred_bboxes, 4, -1)
    b2x1, b2y1, b2x2, b2y2 = jnp.split(target_bboxes, 4, -1)
    w1, h1 = b1x2 - b1x1, b1y2 - b1y1 + eps
    w2, h2 = b2x2 - b2x1, b2y2 - b2y1 + eps
    inter = (jnp.minimum(b1x2, b2x2) - jnp.maximum(b1x1, b2x1)).clip(0) * \
            (jnp.minimum(b1y2, b2y2) - jnp.maximum(b1y1, b2y1)).clip(0)
    union = w1 * h1 + w2 * h2 - inter + eps
    iou = inter / union
    cw = jnp.maximum(b1x2, b2x2) - jnp.minimum(b1x1, b2x1)
    ch = jnp.maximum(b1y2, b2y2) - jnp.minimum(b1y1, b2y1)
    c2 = cw ** 2 + ch ** 2 + eps
    rho2 = ((b2x1 + b2x2 - b1x1 - b1x2) ** 2 + (b2y1 + b2y2 - b1y1 - b1y2) ** 2) / 4
    v = (4 / math.pi ** 2) * (jnp.arctan(w2 / h2) - jnp.arctan(w1 / h1)) ** 2
    alpha = v / (v - iou + (1 + eps))
    ciou = iou - (rho2 / c2 + v * alpha)
    loss_iou = jnp.sum(mask * (1.0 - ciou) * weight) / target_scores_sum
    if not use_dfl:
        return loss_iou, jnp.float32(0.0)
    ap = anchor_points[None]
    tltrb = jnp.concatenate([ap - target_bboxes[..., :2],
                             target_bboxes[..., 2:] - ap], -1).clip(0.0, reg_max - 0.01)
    pd = pred_dist.reshape(B, N, 4, r1)
    mmax = pd.max(-1)
    lse = mmax + jnp.log(jnp.sum(jnp.exp(pd - mmax[..., None]), -1))
    tl = jnp.floor(tltrb).astype(jnp.int32)
    tr = tl + 1
    wl = (tl.astype(jnp.float32) + 1.0) - tltrb
    wr = 1.0 - wl
    gl = jnp.take_along_axis(pd, tl[..., None], axis=-1)[..., 0]
    gr = jnp.take_along_axis(pd, tr[..., None], axis=-1)[..., 0]
    dfl = ((lse - gl) * wl + (lse - gr) * wr).mean(-1, keepdims=True)
    loss_dfl = jnp.sum(mask * dfl * weight) / target_scores_sum
    return loss_iou, loss_dfl


if __name__ == "__main__":
    key = jax.random.PRNGKey(0)
    B, N, nc, reg_max = 2, 72, 8, 16
    r1 = reg_max + 1
    k1, k2, k3, k4, k5, k6, k7 = jax.random.split(key, 7)

    # Anchor points: centers of an 8x9 grid (N = 72), stride 1.
    gy, gx = jnp.meshgrid(jnp.arange(8, dtype=jnp.float32) + 0.5,
                          jnp.arange(9, dtype=jnp.float32) + 0.5, indexing="ij")
    anchor_points = jnp.stack([gx.reshape(-1), gy.reshape(-1)], -1)      # (72, 2)

    half_t = jax.random.uniform(k1, (B, N, 2), minval=0.5, maxval=3.0)
    tc = anchor_points[None] + jax.random.uniform(k2, (B, N, 2), minval=-0.5, maxval=0.5)
    target_bboxes = jnp.concatenate([tc - half_t, tc + half_t], -1)      # xyxy

    half_p = jax.random.uniform(k3, (B, N, 2), minval=0.5, maxval=3.0)
    pc = anchor_points[None] + jax.random.uniform(k4, (B, N, 2), minval=-0.7, maxval=0.7)
    pred_bboxes = jnp.concatenate([pc - half_p, pc + half_p], -1)        # xyxy

    pred_dist = jax.random.normal(k5, (B, N, 4 * r1), dtype=jnp.float32)
    target_scores = jax.random.uniform(k6, (B, N, nc), minval=0.0, maxval=1.0)
    fg_mask = jax.random.bernoulli(k7, 0.5, (B, N))
    target_scores_sum = jnp.maximum(target_scores.sum(), 1.0)

    loss_iou, loss_dfl = bbox_loss(pred_dist, pred_bboxes, anchor_points,
                                   target_bboxes, target_scores,
                                   target_scores_sum, fg_mask,
                                   reg_max=reg_max, use_dfl=True)
    jax.block_until_ready((loss_iou, loss_dfl))

    ref_iou, ref_dfl = _reference(pred_dist, pred_bboxes, anchor_points,
                                  target_bboxes, target_scores,
                                  target_scores_sum, fg_mask, reg_max, True)
    assert jnp.allclose(loss_iou, ref_iou, rtol=2e-3, atol=1e-4), (loss_iou, ref_iou)
    assert jnp.allclose(loss_dfl, ref_dfl, rtol=2e-3, atol=1e-4), (loss_dfl, ref_dfl)
    print("KERNEL_OK")
</pallas_src>

<mosaic_0001>
module attributes {stable_mosaic.version = 11 : i64} {
  func.func @_bbox_loss_kernel(%arg0: i32, %arg1: memref<4x256xf32, #tpu.memory_space<vmem>>, %arg2: memref<4x256xf32, #tpu.memory_space<vmem>>, %arg3: memref<2x256xf32, #tpu.memory_space<vmem>>, %arg4: memref<1x256xf32, #tpu.memory_space<vmem>>, %arg5: memref<4x17x256xf32, #tpu.memory_space<vmem>>, %arg6: memref<1x1x128xf32, #tpu.memory_space<vmem>>, %arg7: memref<1x1x128xf32, #tpu.memory_space<vmem>>) attributes {dimension_semantics = [#tpu.dimension_semantics<parallel>], iteration_bounds = array<i64: 1>, scalar_prefetch = 0 : i64, scratch_operands = 0 : i64, tpu.core_type = #tpu.core_type<tc>, window_params = [{transform_indices = @transform_0, window_bounds = array<i64: 4, 256>}, {transform_indices = @transform_1, window_bounds = array<i64: 4, 256>}, {transform_indices = @transform_2, window_bounds = array<i64: 2, 256>}, {transform_indices = @transform_3, window_bounds = array<i64: 1, 256>}, {transform_indices = @transform_4, window_bounds = array<i64: 4, 17, 256>}, {transform_indices = @transform_5, window_bounds = array<i64: 1, 1, 128>}, {transform_indices = @transform_6, window_bounds = array<i64: 1, 1, 128>}]} {
    %c0 = arith.constant 0 : index
    %c0_0 = arith.constant 0 : index
    %0 = vector.load %arg1[%c0, %c0_0] : memref<4x256xf32, #tpu.memory_space<vmem>>, vector<4x256xf32>
    %c0_1 = arith.constant 0 : index
    %c0_2 = arith.constant 0 : index
    %1 = vector.load %arg2[%c0_1, %c0_2] : memref<4x256xf32, #tpu.memory_space<vmem>>, vector<4x256xf32>
    %c0_3 = arith.constant 0 : index
    %c0_4 = arith.constant 0 : index
    %2 = vector.load %arg4[%c0_3, %c0_4] : memref<1x256xf32, #tpu.memory_space<vmem>>, vector<1x256xf32>
    %3 = vector.extract_strided_slice %0 {offsets = [0, 0], sizes = [1, 256], strides = [1, 1]} : vector<4x256xf32> to vector<1x256xf32>
    %4 = vector.extract_strided_slice %0 {offsets = [1, 0], sizes = [1, 256], strides = [1, 1]} : vector<4x256xf32> to vector<1x256xf32>
    %5 = vector.extract_strided_slice %0 {offsets = [2, 0], sizes = [1, 256], strides = [1, 1]} : vector<4x256xf32> to vector<1x256xf32>
    %6 = vector.extract_strided_slice %0 {offsets = [3, 0], sizes = [1, 256], strides = [1, 1]} : vector<4x256xf32> to vector<1x256xf32>
    %7 = vector.extract_strided_slice %1 {offsets = [0, 0], sizes = [1, 256], strides = [1, 1]} : vector<4x256xf32> to vector<1x256xf32>
    %8 = vector.extract_strided_slice %1 {offsets = [1, 0], sizes = [1, 256], strides = [1, 1]} : vector<4x256xf32> to vector<1x256xf32>
    %9 = vector.extract_strided_slice %1 {offsets = [2, 0], sizes = [1, 256], strides = [1, 1]} : vector<4x256xf32> to vector<1x256xf32>
    %10 = vector.extract_strided_slice %1 {offsets = [3, 0], sizes = [1, 256], strides = [1, 1]} : vector<4x256xf32> to vector<1x256xf32>
    %11 = arith.minimumf %0, %1 : vector<4x256xf32>
    %12 = arith.maximumf %0, %1 : vector<4x256xf32>
    %13 = arith.subf %5, %3 : vector<1x256xf32>
    %14 = arith.subf %6, %4 : vector<1x256xf32>
    %cst = arith.constant 1.000000e-07 : f32
    %15 = vector.broadcast %cst : f32 to vector<1x256xf32>
    %16 = arith.addf %14, %15 : vector<1x256xf32>
    %17 = arith.subf %9, %7 : vector<1x256xf32>
    %18 = arith.subf %10, %8 : vector<1x256xf32>
    %cst_5 = arith.constant 1.000000e-07 : f32
    %19 = vector.broadcast %cst_5 : f32 to vector<1x256xf32>
    %20 = arith.addf %18, %19 : vector<1x256xf32>
    %21 = vector.extract_strided_slice %11 {offsets = [2, 0], sizes = [1, 256], strides = [1, 1]} : vector<4x256xf32> to vector<1x256xf32>
    %22 = vector.extract_strided_slice %12 {offsets = [0, 0], sizes = [1, 256], strides = [1, 1]} : vector<4x256xf32> to vector<1x256xf32>
    %23 = arith.subf %21, %22 : vector<1x256xf32>
    %cst_6 = arith.constant 0.000000e+00 : f32
    %24 = vector.broadcast %cst_6 : f32 to vector<1x256xf32>
    %25 = arith.maximumf %23, %24 : vector<1x256xf32>
    %26 = vector.extract_strided_slice %11 {offsets = [3, 0], sizes = [1, 256], strides = [1, 1]} : vector<4x256xf32> to vector<1x256xf32>
    %27 = vector.extract_strided_slice %12 {offsets = [1, 0], sizes = [1, 256], strides = [1, 1]} : vector<4x256xf32> to vector<1x256xf32>
    %28 = arith.subf %26, %27 : vector<1x256xf32>
    %cst_7 = arith.constant 0.000000e+00 : f32
    %29 = vector.broadcast %cst_7 : f32 to vector<1x256xf32>
    %30 = arith.maximumf %28, %29 : vector<1x256xf32>
    %31 = arith.mulf %25, %30 : vector<1x256xf32>
    %32 = arith.mulf %13, %16 : vector<1x256xf32>
    %33 = arith.mulf %17, %20 : vector<1x256xf32>
    %34 = arith.addf %32, %33 : vector<1x256xf32>
    %35 = arith.subf %34, %31 : vector<1x256xf32>
    %cst_8 = arith.constant 1.000000e-07 : f32
    %36 = vector.broadcast %cst_8 : f32 to vector<1x256xf32>
    %37 = arith.addf %35, %36 : vector<1x256xf32>
    %38 = arith.divf %31, %37 : vector<1x256xf32>
    %39 = vector.extract_strided_slice %12 {offsets = [2, 0], sizes = [1, 256], strides = [1, 1]} : vector<4x256xf32> to vector<1x256xf32>
    %40 = vector.extract_strided_slice %11 {offsets = [0, 0], sizes = [1, 256], strides = [1, 1]} : vector<4x256xf32> to vector<1x256xf32>
    %41 = arith.subf %39, %40 : vector<1x256xf32>
    %42 = vector.extract_strided_slice %12 {offsets = [3, 0], sizes = [1, 256], strides = [1, 1]} : vector<4x256xf32> to vector<1x256xf32>
    %43 = vector.extract_strided_slice %11 {offsets = [1, 0], sizes = [1, 256], strides = [1, 1]} : vector<4x256xf32> to vector<1x256xf32>
    %44 = arith.subf %42, %43 : vector<1x256xf32>
    %45 = arith.mulf %41, %41 : vector<1x256xf32>
    %46 = arith.mulf %44, %44 : vector<1x256xf32>
    %47 = arith.addf %45, %46 : vector<1x256xf32>
    %cst_9 = arith.constant 1.000000e-07 : f32
    %48 = vector.broadcast %cst_9 : f32 to vector<1x256xf32>
    %49 = arith.addf %47, %48 : vector<1x256xf32>
    %50 = arith.addf %7, %9 : vector<1x256xf32>
    %51 = arith.addf %3, %5 : vector<1x256xf32>
    %52 = arith.subf %50, %51 : vector<1x256xf32>
    %53 = arith.addf %8, %10 : vector<1x256xf32>
    %54 = arith.addf %4, %6 : vector<1x256xf32>
    %55 = arith.subf %53, %54 : vector<1x256xf32>
    %56 = arith.mulf %52, %52 : vector<1x256xf32>
    %57 = arith.mulf %55, %55 : vector<1x256xf32>
    %58 = arith.addf %56, %57 : vector<1x256xf32>
    %cst_10 = arith.constant 2.500000e-01 : f32
    %59 = vector.broadcast %cst_10 : f32 to vector<1x256xf32>
    %60 = arith.mulf %58, %59 : vector<1x256xf32>
    %61 = tpu.reciprocal %20 {approx = true} : vector<1x256xf32> -> vector<1x256xf32>
    %62 = arith.mulf %17, %61 : vector<1x256xf32>
    %63 = tpu.reciprocal %16 {approx = true} : vector<1x256xf32> -> vector<1x256xf32>
    %64 = arith.mulf %13, %63 : vector<1x256xf32>
    %cst_11 = arith.constant 0.000000e+00 : f32
    %65 = vector.broadcast %cst_11 : f32 to vector<1x256xf32>
    %66 = arith.cmpf olt, %62, %65 : vector<1x256xf32>
    %cst_12 = arith.constant 0.000000e+00 : f32
    %67 = vector.broadcast %cst_12 : f32 to vector<1x256xf32>
    %68 = arith.cmpf ogt, %62, %67 : vector<1x256xf32>
    %cst_13 = arith.constant 1.000000e+00 : f32
    %cst_14 = arith.constant 0.000000e+00 : f32
    %69 = vector.broadcast %cst_13 : f32 to vector<1x256xf32>
    %70 = vector.broadcast %cst_14 : f32 to vector<1x256xf32>
    %71 = arith.select %68, %69, %70 : vector<1x256xi1>, vector<1x256xf32>
    %cst_15 = arith.constant -1.000000e+00 : f32
    %72 = vector.broadcast %cst_15 : f32 to vector<1x256xf32>
    %73 = arith.select %66, %72, %71 : vector<1x256xi1>, vector<1x256xf32>
    %74 = math.absf %62 : vector<1x256xf32>
    %cst_16 = arith.constant 2.41421366 : f32
    %75 = vector.broadcast %cst_16 : f32 to vector<1x256xf32>
    %76 = arith.cmpf ogt, %74, %75 : vector<1x256xf32>
    %cst_17 = arith.constant 0.414213568 : f32
    %77 = vector.broadcast %cst_17 : f32 to vector<1x256xf32>
    %78 = arith.cmpf ogt, %74, %77 : vector<1x256xf32>
    %cst_18 = arith.constant dense<true> : vector<1x256xi1>
    %79 = arith.xori %76, %cst_18 : vector<1x256xi1>
    %80 = arith.andi %78, %79 : vector<1x256xi1>
    %cst_19 = arith.constant 1.000000e+00 : f32
    %81 = vector.broadcast %cst_19 : f32 to vector<1x256xf32>
    %82 = arith.select %76, %74, %81 : vector<1x256xi1>, vector<1x256xf32>
    %cst_20 = arith.constant -1.000000e+00 : f32
    %83 = vector.broadcast %cst_20 : f32 to vector<1x256xf32>
    %84 = arith.divf %83, %82 : vector<1x256xf32>
    %cst_21 = arith.constant 1.000000e+00 : f32
    %85 = vector.broadcast %cst_21 : f32 to vector<1x256xf32>
    %86 = arith.subf %74, %85 : vector<1x256xf32>
    %cst_22 = arith.constant 1.000000e+00 : f32
    %87 = vector.broadcast %cst_22 : f32 to vector<1x256xf32>
    %88 = arith.addf %74, %87 : vector<1x256xf32>
    %89 = arith.divf %86, %88 : vector<1x256xf32>
    %90 = arith.select %80, %89, %74 : vector<1x256xi1>, vector<1x256xf32>
    %91 = arith.select %76, %84, %90 : vector<1x256xi1>, vector<1x256xf32>
    %cst_23 = arith.constant 0.785398185 : f32
    %cst_24 = arith.constant 0.000000e+00 : f32
    %92 = vector.broadcast %cst_23 : f32 to vector<1x256xf32>
    %93 = vector.broadcast %cst_24 : f32 to vector<1x256xf32>
    %94 = arith.select %80, %92, %93 : vector<1x256xi1>, vector<1x256xf32>
    %cst_25 = arith.constant 1.57079637 : f32
    %95 = vector.broadcast %cst_25 : f32 to vector<1x256xf32>
    %96 = arith.select %76, %95, %94 : vector<1x256xi1>, vector<1x256xf32>
    %97 = arith.mulf %91, %91 : vector<1x256xf32>
    %cst_26 = arith.constant 0.0805374458 : f32
    %98 = vector.broadcast %cst_26 : f32 to vector<1x256xf32>
    %99 = arith.mulf %98, %97 : vector<1x256xf32>
    %cst_27 = arith.constant 0.138776854 : f32
    %100 = vector.broadcast %cst_27 : f32 to vector<1x256xf32>
    %101 = arith.subf %99, %100 : vector<1x256xf32>
    %102 = arith.mulf %101, %97 : vector<1x256xf32>
    %cst_28 = arith.constant 0.199777111 : f32
    %103 = vector.broadcast %cst_28 : f32 to vector<1x256xf32>
    %104 = arith.addf %102, %103 : vector<1x256xf32>
    %105 = arith.mulf %104, %97 : vector<1x256xf32>
    %cst_29 = arith.constant 0.333329499 : f32
    %106 = vector.broadcast %cst_29 : f32 to vector<1x256xf32>
    %107 = arith.subf %105, %106 : vector<1x256xf32>
    %108 = arith.mulf %107, %97 : vector<1x256xf32>
    %109 = arith.mulf %108, %91 : vector<1x256xf32>
    %110 = arith.addf %109, %91 : vector<1x256xf32>
    %111 = arith.addf %96, %110 : vector<1x256xf32>
    %112 = arith.mulf %73, %111 : vector<1x256xf32>
    %cst_30 = arith.constant 0.000000e+00 : f32
    %113 = vector.broadcast %cst_30 : f32 to vector<1x256xf32>
    %114 = arith.cmpf olt, %64, %113 : vector<1x256xf32>
    %cst_31 = arith.constant 0.000000e+00 : f32
    %115 = vector.broadcast %cst_31 : f32 to vector<1x256xf32>
    %116 = arith.cmpf ogt, %64, %115 : vector<1x256xf32>
    %cst_32 = arith.constant 1.000000e+00 : f32
    %cst_33 = arith.constant 0.000000e+00 : f32
    %117 = vector.broadcast %cst_32 : f32 to vector<1x256xf32>
    %118 = vector.broadcast %cst_33 : f32 to vector<1x256xf32>
    %119 = arith.select %116, %117, %118 : vector<1x256xi1>, vector<1x256xf32>
    %cst_34 = arith.constant -1.000000e+00 : f32
    %120 = vector.broadcast %cst_34 : f32 to vector<1x256xf32>
    %121 = arith.select %114, %120, %119 : vector<1x256xi1>, vector<1x256xf32>
    %122 = math.absf %64 : vector<1x256xf32>
    %cst_35 = arith.constant 2.41421366 : f32
    %123 = vector.broadcast %cst_35 : f32 to vector<1x256xf32>
    %124 = arith.cmpf ogt, %122, %123 : vector<1x256xf32>
    %cst_36 = arith.constant 0.414213568 : f32
    %125 = vector.broadcast %cst_36 : f32 to vector<1x256xf32>
    %126 = arith.cmpf ogt, %122, %125 : vector<1x256xf32>
    %cst_37 = arith.constant dense<true> : vector<1x256xi1>
    %127 = arith.xori %124, %cst_37 : vector<1x256xi1>
    %128 = arith.andi %126, %127 : vector<1x256xi1>
    %cst_38 = arith.constant 1.000000e+00 : f32
    %129 = vector.broadcast %cst_38 : f32 to vector<1x256xf32>
    %130 = arith.select %124, %122, %129 : vector<1x256xi1>, vector<1x256xf32>
    %cst_39 = arith.constant -1.000000e+00 : f32
    %131 = vector.broadcast %cst_39 : f32 to vector<1x256xf32>
    %132 = arith.divf %131, %130 : vector<1x256xf32>
    %cst_40 = arith.constant 1.000000e+00 : f32
    %133 = vector.broadcast %cst_40 : f32 to vector<1x256xf32>
    %134 = arith.subf %122, %133 : vector<1x256xf32>
    %cst_41 = arith.constant 1.000000e+00 : f32
    %135 = vector.broadcast %cst_41 : f32 to vector<1x256xf32>
    %136 = arith.addf %122, %135 : vector<1x256xf32>
    %137 = arith.divf %134, %136 : vector<1x256xf32>
    %138 = arith.select %128, %137, %122 : vector<1x256xi1>, vector<1x256xf32>
    %139 = arith.select %124, %132, %138 : vector<1x256xi1>, vector<1x256xf32>
    %cst_42 = arith.constant 0.785398185 : f32
    %cst_43 = arith.constant 0.000000e+00 : f32
    %140 = vector.broadcast %cst_42 : f32 to vector<1x256xf32>
    %141 = vector.broadcast %cst_43 : f32 to vector<1x256xf32>
    %142 = arith.select %128, %140, %141 : vector<1x256xi1>, vector<1x256xf32>
    %cst_44 = arith.constant 1.57079637 : f32
    %143 = vector.broadcast %cst_44 : f32 to vector<1x256xf32>
    %144 = arith.select %124, %143, %142 : vector<1x256xi1>, vector<1x256xf32>
    %145 = arith.mulf %139, %139 : vector<1x256xf32>
    %cst_45 = arith.constant 0.0805374458 : f32
    %146 = vector.broadcast %cst_45 : f32 to vector<1x256xf32>
    %147 = arith.mulf %146, %145 : vector<1x256xf32>
    %cst_46 = arith.constant 0.138776854 : f32
    %148 = vector.broadcast %cst_46 : f32 to vector<1x256xf32>
    %149 = arith.subf %147, %148 : vector<1x256xf32>
    %150 = arith.mulf %149, %145 : vector<1x256xf32>
    %cst_47 = arith.constant 0.199777111 : f32
    %151 = vector.broadcast %cst_47 : f32 to vector<1x256xf32>
    %152 = arith.addf %150, %151 : vector<1x256xf32>
    %153 = arith.mulf %152, %145 : vector<1x256xf32>
    %cst_48 = arith.constant 0.333329499 : f32
    %154 = vector.broadcast %cst_48 : f32 to vector<1x256xf32>
    %155 = arith.subf %153, %154 : vector<1x256xf32>
    %156 = arith.mulf %155, %145 : vector<1x256xf32>
    %157 = arith.mulf %156, %139 : vector<1x256xf32>
    %158 = arith.addf %157, %139 : vector<1x256xf32>
    %159 = arith.addf %144, %158 : vector<1x256xf32>
    %160 = arith.mulf %121, %159 : vector<1x256xf32>
    %161 = arith.subf %112, %160 : vector<1x256xf32>
    %162 = arith.mulf %161, %161 : vector<1x256xf32>
    %cst_49 = arith.constant 0.405284733 : f32
    %163 = vector.broadcast %cst_49 : f32 to vector<1x256xf32>
    %164 = arith.mulf %163, %162 : vector<1x256xf32>
    %165 = arith.subf %164, %38 : vector<1x256xf32>
    %cst_50 = arith.constant 1.000000e+00 : f32
    %cst_51 = arith.constant 1.000000e-07 : f32
    %166 = arith.addf %cst_50, %cst_51 : f32
    %167 = vector.broadcast %166 : f32 to vector<1x256xf32>
    %168 = arith.addf %165, %167 : vector<1x256xf32>
    %169 = tpu.reciprocal %168 {approx = true} : vector<1x256xf32> -> vector<1x256xf32>
    %170 = arith.mulf %164, %169 : vector<1x256xf32>
    %171 = arith.divf %60, %49 : vector<1x256xf32>
    %172 = arith.mulf %164, %170 : vector<1x256xf32>
    %173 = arith.addf %171, %172 : vector<1x256xf32>
    %174 = arith.subf %38, %173 : vector<1x256xf32>
    %cst_52 = arith.constant 1.000000e+00 : f32
    %175 = vector.broadcast %cst_52 : f32 to vector<1x256xf32>
    %176 = arith.subf %175, %174 : vector<1x256xf32>
    %177 = arith.mulf %2, %176 : vector<1x256xf32>
    %cst_53 = arith.constant dense<0.000000e+00> : vector<1xf32>
    %178 = vector.multi_reduction <add>, %177, %cst_53 [1] : vector<1x256xf32> to vector<1xf32>
    %179 = vector.shape_cast %178 : vector<1xf32> to vector<1x1xf32>
    %c0_54 = arith.constant 0 : index
    %c0_55 = arith.constant 0 : index
    %180 = vector.load %arg3[%c0_54, %c0_55] : memref<2x256xf32, #tpu.memory_space<vmem>>, vector<2x256xf32>
    %181 = vector.extract_strided_slice %180 {offsets = [0, 0], sizes = [1, 256], strides = [1, 1]} : vector<2x256xf32> to vector<1x256xf32>
    %182 = vector.extract_strided_slice %180 {offsets = [1, 0], sizes = [1, 256], strides = [1, 1]} : vector<2x256xf32> to vector<1x256xf32>
    %183 = arith.subf %181, %7 : vector<1x256xf32>
    %184 = arith.subf %182, %8 : vector<1x256xf32>
    %185 = arith.subf %9, %181 : vector<1x256xf32>
    %186 = arith.subf %10, %182 : vector<1x256xf32>
    %187 = tpu.iota {dimensions = array<i32: 0>} : vector<17x256xi32>
    %cst_56 = arith.constant 0.000000e+00 : f32
    %188 = vector.broadcast %cst_56 : f32 to vector<1x256xf32>
    %cst_57 = arith.constant 0.000000e+00 : f32
    %cst_58 = arith.constant 1.599000e+01 : f32
    %189 = vector.broadcast %cst_57 : f32 to vector<1x256xf32>
    %190 = arith.maximumf %189, %183 : vector<1x256xf32>
    %191 = vector.broadcast %cst_58 : f32 to vector<1x256xf32>
    %192 = arith.minimumf %191, %190 : vector<1x256xf32>
    %c0_59 = arith.constant 0 : index
    %c0_60 = arith.constant 0 : index
    %c0_61 = arith.constant 0 : index
    %193 = vector.load %arg5[%c0_59, %c0_60, %c0_61] : memref<4x17x256xf32, #tpu.memory_space<vmem>>, vector<1x17x256xf32>
    %194 = vector.shape_cast %193 : vector<1x17x256xf32> to vector<17x256xf32>
    %cst_62 = arith.constant dense<0xFF800000> : vector<256xf32>
    %195 = vector.multi_reduction <maximumf>, %194, %cst_62 [0] : vector<17x256xf32> to vector<256xf32>
    %196 = vector.shape_cast %195 : vector<256xf32> to vector<1x256xf32>
    %197 = vector.broadcast %196 : vector<1x256xf32> to vector<17x256xf32>
    %198 = arith.subf %194, %197 : vector<17x256xf32>
    %199 = math.exp %198 : vector<17x256xf32>
    %cst_63 = arith.constant dense<0.000000e+00> : vector<256xf32>
    %200 = vector.multi_reduction <add>, %199, %cst_63 [0] : vector<17x256xf32> to vector<256xf32>
    %201 = vector.shape_cast %200 : vector<256xf32> to vector<1x256xf32>
    %202 = math.log %201 : vector<1x256xf32>
    %203 = arith.addf %196, %202 : vector<1x256xf32>
    %204 = math.floor %192 : vector<1x256xf32>
    %205 = arith.fptosi %204 : vector<1x256xf32> to vector<1x256xi32>
    %c1_i32 = arith.constant 1 : i32
    %206 = vector.broadcast %c1_i32 : i32 to vector<1x256xi32>
    %207 = arith.addi %205, %206 : vector<1x256xi32>
    %cst_64 = arith.constant 1.000000e+00 : f32
    %208 = vector.broadcast %cst_64 : f32 to vector<1x256xf32>
    %209 = arith.addf %204, %208 : vector<1x256xf32>
    %210 = arith.subf %209, %192 : vector<1x256xf32>
    %cst_65 = arith.constant 1.000000e+00 : f32
    %211 = vector.broadcast %cst_65 : f32 to vector<1x256xf32>
    %212 = arith.subf %211, %210 : vector<1x256xf32>
    %213 = vector.broadcast %205 : vector<1x256xi32> to vector<17x256xi32>
    %214 = arith.cmpi eq, %187, %213 : vector<17x256xi32>
    %cst_66 = arith.constant 0.000000e+00 : f32
    %215 = vector.broadcast %cst_66 : f32 to vector<17x256xf32>
    %216 = arith.select %214, %194, %215 : vector<17x256xi1>, vector<17x256xf32>
    %cst_67 = arith.constant dense<0.000000e+00> : vector<256xf32>
    %217 = vector.multi_reduction <add>, %216, %cst_67 [0] : vector<17x256xf32> to vector<256xf32>
    %218 = vector.shape_cast %217 : vector<256xf32> to vector<1x256xf32>
    %219 = vector.broadcast %207 : vector<1x256xi32> to vector<17x256xi32>
    %220 = arith.cmpi eq, %187, %219 : vector<17x256xi32>
    %cst_68 = arith.constant 0.000000e+00 : f32
    %221 = vector.broadcast %cst_68 : f32 to vector<17x256xf32>
    %222 = arith.select %220, %194, %221 : vector<17x256xi1>, vector<17x256xf32>
    %cst_69 = arith.constant dense<0.000000e+00> : vector<256xf32>
    %223 = vector.multi_reduction <add>, %222, %cst_69 [0] : vector<17x256xf32> to vector<256xf32>
    %224 = vector.shape_cast %223 : vector<256xf32> to vector<1x256xf32>
    %225 = arith.subf %203, %218 : vector<1x256xf32>
    %226 = arith.mulf %225, %210 : vector<1x256xf32>
    %227 = arith.addf %188, %226 : vector<1x256xf32>
    %228 = arith.subf %203, %224 : vector<1x256xf32>
    %229 = arith.mulf %228, %212 : vector<1x256xf32>
    %230 = arith.addf %227, %229 : vector<1x256xf32>
    %cst_70 = arith.constant 0.000000e+00 : f32
    %cst_71 = arith.constant 1.599000e+01 : f32
    %231 = vector.broadcast %cst_70 : f32 to vector<1x256xf32>
    %232 = arith.maximumf %231, %184 : vector<1x256xf32>
    %233 = vector.broadcast %cst_71 : f32 to vector<1x256xf32>
    %234 = arith.minimumf %233, %232 : vector<1x256xf32>
    %c1 = arith.constant 1 : index
    %c0_72 = arith.constant 0 : index
    %c0_73 = arith.constant 0 : index
    %235 = vector.load %arg5[%c1, %c0_72, %c0_73] : memref<4x17x256xf32, #tpu.memory_space<vmem>>, vector<1x17x256xf32>
    %236 = vector.shape_cast %235 : vector<1x17x256xf32> to vector<17x256xf32>
    %cst_74 = arith.constant dense<0xFF800000> : vector<256xf32>
    %237 = vector.multi_reduction <maximumf>, %236, %cst_74 [0] : vector<17x256xf32> to vector<256xf32>
    %238 = vector.shape_cast %237 : vector<256xf32> to vector<1x256xf32>
    %239 = vector.broadcast %238 : vector<1x256xf32> to vector<17x256xf32>
    %240 = arith.subf %236, %239 : vector<17x256xf32>
    %241 = math.exp %240 : vector<17x256xf32>
    %cst_75 = arith.constant dense<0.000000e+00> : vector<256xf32>
    %242 = vector.multi_reduction <add>, %241, %cst_75 [0] : vector<17x256xf32> to vector<256xf32>
    %243 = vector.shape_cast %242 : vector<256xf32> to vector<1x256xf32>
    %244 = math.log %243 : vector<1x256xf32>
    %245 = arith.addf %238, %244 : vector<1x256xf32>
    %246 = math.floor %234 : vector<1x256xf32>
    %247 = arith.fptosi %246 : vector<1x256xf32> to vector<1x256xi32>
    %c1_i32_76 = arith.constant 1 : i32
    %248 = vector.broadcast %c1_i32_76 : i32 to vector<1x256xi32>
    %249 = arith.addi %247, %248 : vector<1x256xi32>
    %cst_77 = arith.constant 1.000000e+00 : f32
    %250 = vector.broadcast %cst_77 : f32 to vector<1x256xf32>
    %251 = arith.addf %246, %250 : vector<1x256xf32>
    %252 = arith.subf %251, %234 : vector<1x256xf32>
    %cst_78 = arith.constant 1.000000e+00 : f32
    %253 = vector.broadcast %cst_78 : f32 to vector<1x256xf32>
    %254 = arith.subf %253, %252 : vector<1x256xf32>
    %255 = vector.broadcast %247 : vector<1x256xi32> to vector<17x256xi32>
    %256 = arith.cmpi eq, %187, %255 : vector<17x256xi32>
    %cst_79 = arith.constant 0.000000e+00 : f32
    %257 = vector.broadcast %cst_79 : f32 to vector<17x256xf32>
    %258 = arith.select %256, %236, %257 : vector<17x256xi1>, vector<17x256xf32>
    %cst_80 = arith.constant dense<0.000000e+00> : vector<256xf32>
    %259 = vector.multi_reduction <add>, %258, %cst_80 [0] : vector<17x256xf32> to vector<256xf32>
    %260 = vector.shape_cast %259 : vector<256xf32> to vector<1x256xf32>
    %261 = vector.broadcast %249 : vector<1x256xi32> to vector<17x256xi32>
    %262 = arith.cmpi eq, %187, %261 : vector<17x256xi32>
    %cst_81 = arith.constant 0.000000e+00 : f32
    %263 = vector.broadcast %cst_81 : f32 to vector<17x256xf32>
    %264 = arith.select %262, %236, %263 : vector<17x256xi1>, vector<17x256xf32>
    %cst_82 = arith.constant dense<0.000000e+00> : vector<256xf32>
    %265 = vector.multi_reduction <add>, %264, %cst_82 [0] : vector<17x256xf32> to vector<256xf32>
    %266 = vector.shape_cast %265 : vector<256xf32> to vector<1x256xf32>
    %267 = arith.subf %245, %260 : vector<1x256xf32>
    %268 = arith.mulf %267, %252 : vector<1x256xf32>
    %269 = arith.addf %230, %268 : vector<1x256xf32>
    %270 = arith.subf %245, %266 : vector<1x256xf32>
    %271 = arith.mulf %270, %254 : vector<1x256xf32>
    %272 = arith.addf %269, %271 : vector<1x256xf32>
    %cst_83 = arith.constant 0.000000e+00 : f32
    %cst_84 = arith.constant 1.599000e+01 : f32
    %273 = vector.broadcast %cst_83 : f32 to vector<1x256xf32>
    %274 = arith.maximumf %273, %185 : vector<1x256xf32>
    %275 = vector.broadcast %cst_84 : f32 to vector<1x256xf32>
    %276 = arith.minimumf %275, %274 : vector<1x256xf32>
    %c2 = arith.constant 2 : index
    %c0_85 = arith.constant 0 : index
    %c0_86 = arith.constant 0 : index
    %277 = vector.load %arg5[%c2, %c0_85, %c0_86] : memref<4x17x256xf32, #tpu.memory_space<vmem>>, vector<1x17x256xf32>
    %278 = vector.shape_cast %277 : vector<1x17x256xf32> to vector<17x256xf32>
    %cst_87 = arith.constant dense<0xFF800000> : vector<256xf32>
    %279 = vector.multi_reduction <maximumf>, %278, %cst_87 [0] : vector<17x256xf32> to vector<256xf32>
    %280 = vector.shape_cast %279 : vector<256xf32> to vector<1x256xf32>
    %281 = vector.broadcast %280 : vector<1x256xf32> to vector<17x256xf32>
    %282 = arith.subf %278, %281 : vector<17x256xf32>
    %283 = math.exp %282 : vector<17x256xf32>
    %cst_88 = arith.constant dense<0.000000e+00> : vector<256xf32>
    %284 = vector.multi_reduction <add>, %283, %cst_88 [0] : vector<17x256xf32> to vector<256xf32>
    %285 = vector.shape_cast %284 : vector<256xf32> to vector<1x256xf32>
    %286 = math.log %285 : vector<1x256xf32>
    %287 = arith.addf %280, %286 : vector<1x256xf32>
    %288 = math.floor %276 : vector<1x256xf32>
    %289 = arith.fptosi %288 : vector<1x256xf32> to vector<1x256xi32>
    %c1_i32_89 = arith.constant 1 : i32
    %290 = vector.broadcast %c1_i32_89 : i32 to vector<1x256xi32>
    %291 = arith.addi %289, %290 : vector<1x256xi32>
    %cst_90 = arith.constant 1.000000e+00 : f32
    %292 = vector.broadcast %cst_90 : f32 to vector<1x256xf32>
    %293 = arith.addf %288, %292 : vector<1x256xf32>
    %294 = arith.subf %293, %276 : vector<1x256xf32>
    %cst_91 = arith.constant 1.000000e+00 : f32
    %295 = vector.broadcast %cst_91 : f32 to vector<1x256xf32>
    %296 = arith.subf %295, %294 : vector<1x256xf32>
    %297 = vector.broadcast %289 : vector<1x256xi32> to vector<17x256xi32>
    %298 = arith.cmpi eq, %187, %297 : vector<17x256xi32>
    %cst_92 = arith.constant 0.000000e+00 : f32
    %299 = vector.broadcast %cst_92 : f32 to vector<17x256xf32>
    %300 = arith.select %298, %278, %299 : vector<17x256xi1>, vector<17x256xf32>
    %cst_93 = arith.constant dense<0.000000e+00> : vector<256xf32>
    %301 = vector.multi_reduction <add>, %300, %cst_93 [0] : vector<17x256xf32> to vector<256xf32>
    %302 = vector.shape_cast %301 : vector<256xf32> to vector<1x256xf32>
    %303 = vector.broadcast %291 : vector<1x256xi32> to vector<17x256xi32>
    %304 = arith.cmpi eq, %187, %303 : vector<17x256xi32>
    %cst_94 = arith.constant 0.000000e+00 : f32
    %305 = vector.broadcast %cst_94 : f32 to vector<17x256xf32>
    %306 = arith.select %304, %278, %305 : vector<17x256xi1>, vector<17x256xf32>
    %cst_95 = arith.constant dense<0.000000e+00> : vector<256xf32>
    %307 = vector.multi_reduction <add>, %306, %cst_95 [0] : vector<17x256xf32> to vector<256xf32>
    %308 = vector.shape_cast %307 : vector<256xf32> to vector<1x256xf32>
    %309 = arith.subf %287, %302 : vector<1x256xf32>
    %310 = arith.mulf %309, %294 : vector<1x256xf32>
    %311 = arith.addf %272, %310 : vector<1x256xf32>
    %312 = arith.subf %287, %308 : vector<1x256xf32>
    %313 = arith.mulf %312, %296 : vector<1x256xf32>
    %314 = arith.addf %311, %313 : vector<1x256xf32>
    %cst_96 = arith.constant 0.000000e+00 : f32
    %cst_97 = arith.constant 1.599000e+01 : f32
    %315 = vector.broadcast %cst_96 : f32 to vector<1x256xf32>
    %316 = arith.maximumf %315, %186 : vector<1x256xf32>
    %317 = vector.broadcast %cst_97 : f32 to vector<1x256xf32>
    %318 = arith.minimumf %317, %316 : vector<1x256xf32>
    %c3 = arith.constant 3 : index
    %c0_98 = arith.constant 0 : index
    %c0_99 = arith.constant 0 : index
    %319 = vector.load %arg5[%c3, %c0_98, %c0_99] : memref<4x17x256xf32, #tpu.memory_space<vmem>>, vector<1x17x256xf32>
    %320 = vector.shape_cast %319 : vector<1x17x256xf32> to vector<17x256xf32>
    %cst_100 = arith.constant dense<0xFF800000> : vector<256xf32>
    %321 = vector.multi_reduction <maximumf>, %320, %cst_100 [0] : vector<17x256xf32> to vector<256xf32>
    %322 = vector.shape_cast %321 : vector<256xf32> to vector<1x256xf32>
    %323 = vector.broadcast %322 : vector<1x256xf32> to vector<17x256xf32>
    %324 = arith.subf %320, %323 : vector<17x256xf32>
    %325 = math.exp %324 : vector<17x256xf32>
    %cst_101 = arith.constant dense<0.000000e+00> : vector<256xf32>
    %326 = vector.multi_reduction <add>, %325, %cst_101 [0] : vector<17x256xf32> to vector<256xf32>
    %327 = vector.shape_cast %326 : vector<256xf32> to vector<1x256xf32>
    %328 = math.log %327 : vector<1x256xf32>
    %329 = arith.addf %322, %328 : vector<1x256xf32>
    %330 = math.floor %318 : vector<1x256xf32>
    %331 = arith.fptosi %330 : vector<1x256xf32> to vector<1x256xi32>
    %c1_i32_102 = arith.constant 1 : i32
    %332 = vector.broadcast %c1_i32_102 : i32 to vector<1x256xi32>
    %333 = arith.addi %331, %332 : vector<1x256xi32>
    %cst_103 = arith.constant 1.000000e+00 : f32
    %334 = vector.broadcast %cst_103 : f32 to vector<1x256xf32>
    %335 = arith.addf %330, %334 : vector<1x256xf32>
    %336 = arith.subf %335, %318 : vector<1x256xf32>
    %cst_104 = arith.constant 1.000000e+00 : f32
    %337 = vector.broadcast %cst_104 : f32 to vector<1x256xf32>
    %338 = arith.subf %337, %336 : vector<1x256xf32>
    %339 = vector.broadcast %331 : vector<1x256xi32> to vector<17x256xi32>
    %340 = arith.cmpi eq, %187, %339 : vector<17x256xi32>
    %cst_105 = arith.constant 0.000000e+00 : f32
    %341 = vector.broadcast %cst_105 : f32 to vector<17x256xf32>
    %342 = arith.select %340, %320, %341 : vector<17x256xi1>, vector<17x256xf32>
    %cst_106 = arith.constant dense<0.000000e+00> : vector<256xf32>
    %343 = vector.multi_reduction <add>, %342, %cst_106 [0] : vector<17x256xf32> to vector<256xf32>
    %344 = vector.shape_cast %343 : vector<256xf32> to vector<1x256xf32>
    %345 = vector.broadcast %333 : vector<1x256xi32> to vector<17x256xi32>
    %346 = arith.cmpi eq, %187, %345 : vector<17x256xi32>
    %cst_107 = arith.constant 0.000000e+00 : f32
    %347 = vector.broadcast %cst_107 : f32 to vector<17x256xf32>
    %348 = arith.select %346, %320, %347 : vector<17x256xi1>, vector<17x256xf32>
    %cst_108 = arith.constant dense<0.000000e+00> : vector<256xf32>
    %349 = vector.multi_reduction <add>, %348, %cst_108 [0] : vector<17x256xf32> to vector<256xf32>
    %350 = vector.shape_cast %349 : vector<256xf32> to vector<1x256xf32>
    %351 = arith.subf %329, %344 : vector<1x256xf32>
    %352 = arith.mulf %351, %336 : vector<1x256xf32>
    %353 = arith.addf %314, %352 : vector<1x256xf32>
    %354 = arith.subf %329, %350 : vector<1x256xf32>
    %355 = arith.mulf %354, %338 : vector<1x256xf32>
    %356 = arith.addf %353, %355 : vector<1x256xf32>
    %357 = arith.mulf %2, %356 : vector<1x256xf32>
    %cst_109 = arith.constant dense<0.000000e+00> : vector<1xf32>
    %358 = vector.multi_reduction <add>, %357, %cst_109 [1] : vector<1x256xf32> to vector<1xf32>
    %359 = vector.shape_cast %358 : vector<1xf32> to vector<1x1xf32>
    %cst_110 = arith.constant 2.500000e-01 : f32
    %360 = vector.broadcast %cst_110 : f32 to vector<1x1xf32>
    %361 = arith.mulf %359, %360 : vector<1x1xf32>
    %362 = vector.shape_cast %179 : vector<1x1xf32> to vector<1x1x1xf32>
    %363 = vector.shape_cast %362 : vector<1x1x1xf32> to vector<1x1x1xf32>
    %364 = vector.broadcast %363 : vector<1x1x1xf32> to vector<1x1x128xf32>
    %c0_111 = arith.constant 0 : index
    %c0_112 = arith.constant 0 : index
    %c0_113 = arith.constant 0 : index
    %365 = vector.load %arg6[%c0_111, %c0_112, %c0_113] : memref<1x1x128xf32, #tpu.memory_space<vmem>>, vector<1x1x128xf32>
    tpu.vector_store %arg6[%c0_111, %c0_112, %c0_113], %364 {strides = array<i32>} : memref<1x1x128xf32, #tpu.memory_space<vmem>>, vector<1x1x128xf32>,
    %366 = vector.shape_cast %361 : vector<1x1xf32> to vector<1x1x1xf32>
    %367 = vector.shape_cast %366 : vector<1x1x1xf32> to vector<1x1x1xf32>
    %368 = vector.broadcast %367 : vector<1x1x1xf32> to vector<1x1x128xf32>
    %c0_114 = arith.constant 0 : index
    %c0_115 = arith.constant 0 : index
    %c0_116 = arith.constant 0 : index
    %369 = vector.load %arg7[%c0_114, %c0_115, %c0_116] : memref<1x1x128xf32, #tpu.memory_space<vmem>>, vector<1x1x128xf32>
    tpu.vector_store %arg7[%c0_114, %c0_115, %c0_116], %368 {strides = array<i32>} : memref<1x1x128xf32, #tpu.memory_space<vmem>>, vector<1x1x128xf32>,
    return
  }
  func.func @transform_0(%arg0: i32) -> (i32, i32) {
    %c0_i32 = arith.constant 0 : i32
    %c0_i32_0 = arith.constant 0 : i32
    return %c0_i32, %arg0 : i32, i32
  }
  func.func @transform_1(%arg0: i32) -> (i32, i32) {
    %c0_i32 = arith.constant 0 : i32
    %c0_i32_0 = arith.constant 0 : i32
    return %c0_i32, %arg0 : i32, i32
  }
  func.func @transform_2(%arg0: i32) -> (i32, i32) {
    %c0_i32 = arith.constant 0 : i32
    %c0_i32_0 = arith.constant 0 : i32
    return %c0_i32, %arg0 : i32, i32
  }
  func.func @transform_3(%arg0: i32) -> (i32, i32) {
    %c0_i32 = arith.constant 0 : i32
    %c0_i32_0 = arith.constant 0 : i32
    return %c0_i32, %arg0 : i32, i32
  }
  func.func @transform_4(%arg0: i32) -> (i32, i32, i32) {
    %c0_i32 = arith.constant 0 : i32
    %c0_i32_0 = arith.constant 0 : i32
    %c0_i32_1 = arith.constant 0 : i32
    return %c0_i32, %c0_i32_0, %arg0 : i32, i32, i32
  }
  func.func @transform_5(%arg0: i32) -> (i32, i32, i32) {
    %c0_i32 = arith.constant 0 : i32
    %c0_i32_0 = arith.constant 0 : i32
    %c0_i32_1 = arith.constant 0 : i32
    return %arg0, %c0_i32, %c0_i32_0 : i32, i32, i32
  }
  func.func @transform_6(%arg0: i32) -> (i32, i32, i32) {
    %c0_i32 = arith.constant 0 : i32
    %c0_i32_0 = arith.constant 0 : i32
    %c0_i32_1 = arith.constant 0 : i32
    return %arg0, %c0_i32, %c0_i32_0 : i32, i32, i32
  }
}

</mosaic_0001>

<bundles_post_ra>
// kernel: tpu_custom_call.1
= control target key start
LH: loop header
LB: loop body
LE: loop exit
PB: predicated region body
PF: predicated region fallthrough
CT: control target
= control target key end

     0   :  { %12 = vsyncpa [#allocation3], 0  ;;  %v193_v0 = vlaneseq  ;;  %v1290_v2 = vmov 1983009808   ;;  %vm218_vm0 = vcmask 1040384   ;;  %s2116_s0 = inlined_call_operand.vmem [shape: f32[4,256], index: 0, kind: input, shape index: {}]   ;;  %s2117_s1 = inlined_call_operand.vmem [shape: f32[4,256], index: 1, kind: input, shape index: {}]   ;;  %s2118_s2 = inlined_call_operand.vmem [shape: f32[2,256], index: 2, kind: input, shape index: {}]   ;;  %s2119_s3 = inlined_call_operand.vmem [shape: f32[1,256], index: 3, kind: input, shape index: {}]   ;;  %s2120_s4 = inlined_call_operand.vmem [shape: f32[4,17,256], index: 4, kind: input, shape index: {}]   ;;  %s2121_s5 = inlined_call_operand.hbm [shape: f32[1,1,128], index: 5, kind: output, shape index: {0}]   ;;  %s2122_s6 = inlined_call_operand.hbm [shape: f32[1,1,128], index: 6, kind: output, shape index: {1}]  }
   0x1   :  { %v226_v3 = vunpack.c.l.s4 %v1290_v2  ;;  %v1338_v4 = vld [vmem:[%s2120_s4 + $0x20] sm:$0x1]  ;;  %v1343_v5 = vld [vmem:[%s2120_s4 + $0x28] sm:$0x1]  ;;  %v1359_v10 = vld [vmem:[%s2120_s4 + $0x10] sm:$0xff] }
   0x2   :  { %v1333_v1 = vshrl.u32 %v193_v0, 7  ;;  %v1348_v7 = vld [vmem:[%s2120_s4] sm:$0xff]  ;;  %v1353_v8 = vld [vmem:[%s2120_s4 + $0x8] sm:$0xff]  ;;  %v1364_v11 = vld [vmem:[%s2120_s4 + $0x18] sm:$0xff]  ;;  %v265_v12 = vsel %vm218_vm0, %v1338_v4, -inf  ;;  %v274_v13 = vsel %vm218_vm0, %v1343_v5, -inf }
   0x3   :  { %v227_v6 = vunpack.c.0.s8 %v226_v3  ;;  %v1373_v14 = vld [vmem:[%s2117_s1] sm:$0xff]  ;;  %v266_v15 = vmax.f32 %v1348_v7, %v265_v12  ;;  %v275_v16 = vmax.f32 %v1353_v8, %v274_v13  ;;  %v1381_v18 = vld [vmem:[%s2120_s4 + $0x50] sm:$0x1] }
   0x4   :  { %v1386_v19 = vld [vmem:[%s2118_s2] sm:$0xf] }
   0x5   :  { %v230_v9 = vsub.s32 %v227_v6, %v1333_v1  ;;  %v267_v20 = vmax.f32 %v266_v15, %v1359_v10  ;;  %v276_v21 = vmax.f32 %v275_v16, %v1364_v11 }
   0x7   :  { %v231_v17 = vrot.slane %v1373_v14, %v230_v9 }
   0x8   :  { %13 = vsyncpa [#allocation5], 0  ;;  %v268_v22 = vrot.slane %v267_v20, 4  ;;  %v277_v23 = vrot.slane %v276_v21, 4  ;;  %v1393_v24 = vld [vmem:[%s2120_s4 + $0x30] sm:$0xff]  ;;  %v464_v25 = vsel %vm218_vm0, %v1381_v18, -inf }
   0x9   :  { %v233_v26 = vsub.f32 %v1386_v19, %v231_v17  ;;  %v1401_v27 = vld [vmem:[%s2120_s4 + $0x58] sm:$0x1]  ;;  %v465_v30 = vmax.f32 %v1393_v24, %v464_v25  ;;  %v1412_v34 = vld [vmem:[%s2120_s4 + $0x40] sm:$0xff]  ;;  %v1421_v43 = vld [vmem:[%s2120_s4 + $0x48] sm:$0xff]  ;;  %v1291_v47 = vmov 572653568   ;;  %v1446_v9 = vsub.s32 0, %v1333_v1 }
   0xa   :  { %v269_v28 = vmax.f32 %v267_v20, %v268_v22  ;;  %v278_v29 = vmax.f32 %v276_v21, %v277_v23  ;;  %v1407_v33 = vld [vmem:[%s2120_s4 + $0x38] sm:$0xff]  ;;  %v473_v35 = vsel %vm218_vm0, %v1401_v27, -inf  ;;  %v236_v48 = vunpack.c.l.s4 %v1291_v47 }
   0xb   :  { %v257_v36 = vmax.f32 %v233_v26, 0.0  ;;  %v466_v39 = vmax.f32 %v465_v30, %v1412_v34  ;;  %v474_v40 = vmax.f32 %v1407_v33, %v473_v35  ;;  %v1449_v12 = vsub.s32 2, %v1333_v1  ;;  %v1462_v30 = vld [vmem:[%s2120_s4 + $0x80] sm:$0x1] }
   0xc   :  { %v270_v31 = vrot.slane %v269_v28, 2  ;;  %v279_v32 = vrot.slane %v278_v29, 2  ;;  %v237_v63 = vunpack.c.0.s8 %v236_v48  ;;  %v1292_v20 = vmov 858984721  }
   0xd   :  { %v1423_v44 = vmin.f32 %v257_v36, 15.99  ;;  %v467_v49 = vrot.slane %v466_v39, 4  ;;  %v475_v50 = vmax.f32 %v474_v40, %v1421_v43  ;;  %v245_v21 = vunpack.c.l.s4 %v1292_v20  ;;  %v1530_v20 = vld [vmem:[%s2120_s4 + $0x70] sm:$0xff] }
   0xe   :  { %v271_v37 = vmax.f32 %v269_v28, %v270_v31  ;;  %v280_v38 = vmax.f32 %v278_v29, %v279_v32  ;;  %v240_v15 = vsub.s32 %v237_v63, %v1333_v1  ;;  %v1473_v40 = vadd.s32 16, %v1333_v1 }
   0xf   :  { %v325_v57 = vfloor.f32 %v1423_v44  ;;  %v476_v62 = vrot.slane %v475_v50, 4  ;;  %v468_v2 = vmax.f32 %v466_v39, %v467_v49  ;;  %v246_v29 = vunpack.c.0.s8 %v245_v21 }
  0x10   :  { %v272_v41 = vrot.slane %v271_v37, 1  ;;  %v281_v42 = vrot.slane %v280_v38, 1  ;;  %v241_v26 = vrot.slane %v1386_v19, %v240_v15  ;;  %v657_v47 = vsel %vm218_vm0, %v1462_v30, -inf }
  0x11   :  { %v1149_v6 = vtrunc.f32 %v325_v57  ;;  %v477_v13 = vmax.f32 %v475_v50, %v476_v62  ;;  %v469_v16 = vrot.slane %v468_v2, 2  ;;  %v1486_v49 = vsub.s32 1, %v1333_v1 }
  0x12   :  { %v1425_v45 = vmax.f32 %v271_v37, %v272_v41  ;;  %v1427_v46 = vmax.f32 %v280_v38, %v281_v42  ;;  %v1467_v36 = vsub.f32 %v1373_v14, %v241_v26  ;;  %v1470_v37 = vadd.s32 8, %v1333_v1  ;;  %v1481_v42 = vld [vmem:[%s2120_s4 + $0x60] sm:$0xff] }
  0x13   :  { %v1452_v17 = vcvt.f32.s32 %v1149_v6  ;;  %v478_v25 = vrot.slane %v477_v13, 2  ;;  %v470_v28 = vmax.f32 %v468_v2, %v469_v16  ;;  %v1489_v50 = vsub.s32 %v246_v29, %v1333_v1 }
  0x14   :  { %v283_v51 = vsub.f32 %v1348_v7, %v1425_v45  ;;  %v284_v52 = vsub.f32 %v1353_v8, %v1427_v46  ;;  %v285_v53 = vsub.f32 %v1359_v10, %v1425_v45  ;;  %v286_v54 = vsub.f32 %v1364_v11, %v1427_v46 }
  0x15   :  { %v287_v55 = vsub.f32 %v1338_v4, %v1425_v45  ;;  %v288_v56 = vsub.f32 %v1343_v5, %v1427_v46  ;;  %v334_v22 = vrot.slane %v1452_v17, %v1446_v9  ;;  %v338_v23 = vrot.slane %v1452_v17, %v1449_v12 }
  0x16   :  { %v289_v58 = vmul.f32 1.442695, %v283_v51  ;;  %v291_v59 = vmul.f32 1.442695, %v284_v52  ;;  %v293_v60 = vmul.f32 1.442695, %v285_v53  ;;  %v479_v35 = vmax.f32 %v477_v13, %v478_v25 }
  0x17   :  { %v295_v61 = vmul.f32 1.442695, %v286_v54  ;;  %v297_v0 = vmul.f32 1.442695, %v287_v55  ;;  %v299_v3 = vmul.f32 1.442695, %v288_v56  ;;  %v342_v31 = vrot.slane %v334_v22, %v1446_v9 }
  0x18   :  { %1163 = vpow2.f32 %v289_v58  ;;  %v346_v32 = vrot.slane %v338_v23, %v1446_v9  ;;  %v471_v38 = vrot.slane %v470_v28, 1  ;;  %v1476_v41 = vadd.s32 1, %v1452_v17  ;;  %v1494_v51 = vld [vmem:[%s2120_s4 + $0x88] sm:$0x1] }
  0x19   :  { %1165 = vpow2.f32 %v291_v59  ;;  %vm347_vm1 = vcmp.eq.s32.totalorder %v1333_v1, %v342_v31  ;;  %v480_v53 = vrot.slane %v479_v35, 1  ;;  %v1499_v54 = vsub.s32 3, %v1333_v1 }
  0x1a   :  { %1167 = vpow2.f32 %v293_v60  ;;  %vm348_vm2 = vcmp.eq.s32.totalorder %v1333_v1, %v346_v32  ;;  %vm349_vm3 = vcmp.eq.s32.totalorder %v1470_v37, %v342_v31  ;;  %v1502_v56 = vmax.f32 %v470_v28, %v471_v38 }
  0x1b   :  { %1169 = vpow2.f32 %v295_v61  ;;  %v648_v58 = vmax.f32 %v1467_v36, 0.0  ;;  %v658_v59 = vmax.f32 %v1481_v42, %v657_v47  ;;  %vm350_vm4 = vcmp.eq.s32.totalorder %v1470_v37, %v346_v32 }
  0x1c   :  { %1171 = vpow2.f32 %v297_v0  ;;  %vm351_vm5 = vcmp.eq.s32.totalorder %v1473_v40, %v342_v31  ;;  %v380_v61 = vrot.slane %v1476_v41, %v1446_v9  ;;  %v1512_v62 = vsel %vm218_vm0, %v1494_v51, -inf }
  0x1d   :  { %1173 = vpow2.f32 %v299_v3  ;;  %vm352_vm6 = vcmp.eq.s32.totalorder %v1473_v40, %v346_v32  ;;  %v353_v2 = vsel %vm347_vm1, %v1348_v7, 0.0  ;;  %v354_v3 = vsel %vm348_vm2, %v1353_v8, 0.0  ;;  %v1546_v32 = vld [vmem:[%s2120_s4 + $0x68] sm:$0xff] }
  0x1e   :  { %v355_v15 = vsel %vm349_vm3, %v1359_v10, 0.0  ;;  %v1525_v16 = vmax.f32 %v479_v35, %v480_v53  ;;  %v356_v22 = vsel %vm350_vm4, %v1364_v11, 0.0  ;;  %v357_v23 = vsel %vm351_vm5, %v1338_v4, 0.0 }
  0x1f   :  { %v482_v25 = vsub.f32 %v1393_v24, %v1502_v56  ;;  %v358_v26 = vsel %vm352_vm6, %v1343_v5, 0.0  ;;  %v384_v28 = vrot.slane %v1476_v41, %v1449_v12  ;;  %v388_v29 = vrot.slane %v380_v61, %v1446_v9 }
  0x20   :  { %v484_v31 = vsub.f32 %v1412_v34, %v1502_v56  ;;  %v359_v38 = vadd.f32 %v355_v15, %v353_v2  ;;  %v659_v47 = vmax.f32 %v658_v59, %v1530_v20  ;;  %v368_v53 = vadd.f32 %v356_v22, %v354_v3 }
  0x21   :  { %v485_v61 = vsub.f32 %v1421_v43, %v1525_v16  ;;  %v392_v2 = vrot.slane %v384_v28, %v1446_v9  ;;  %vm393_vm7 = vcmp.eq.s32.totalorder %v1333_v1, %v388_v29  ;;  %v487_v59 = vsub.f32 %v1401_v27, %v1525_v16 }
  0x22   :  { %v492_v3 = vmul.f32 1.442695, %v484_v31  ;;  %vm395_vm8 = vcmp.eq.s32.totalorder %v1470_v37, %v388_v29  ;;  %vm397_vm9 = vcmp.eq.s32.totalorder %v1473_v40, %v388_v29  ;;  %v328_v29 = vadd.f32 1.0, %v325_v57 }
  0x23   :  { %vm394_vm10 = vcmp.eq.s32.totalorder %v1333_v1, %v392_v2  ;;  %vm396_vm11 = vcmp.eq.s32.totalorder %v1470_v37, %v392_v2  ;;  %v498_v28 = vmul.f32 1.442695, %v487_v59  ;;  %vm398_vm12 = vcmp.eq.s32.totalorder %v1473_v40, %v392_v2 }
  0x24   :  { %v1590_v2 = vmin.f32 %v648_v58, 15.99  ;;  %v1593_v59 = vsub.f32 %v328_v29, %v1423_v44  ;;  %v573_v29 = vrot.slane %v1476_v41, %v1486_v49 }
  0x25   :  { %v1164_v39 = vpop.eup %1163 }
  0x26   :  { %v1166_v48 = vpop.eup %1165 }
  0x27   :  { %v1168_v52 = vpop.eup %1167 }
  0x28   :  { %v1170_v55 = vpop.eup %1169  ;;  %v301_v0 = vadd.f32 %v1168_v52, %v1164_v39  ;;  %v486_v39 = vsub.f32 %v1381_v18, %v1502_v56  ;;  %v360_v52 = vsel %vm218_vm0, %v357_v23, 0.0 }
  0x29   :  { %v1172_v60 = vpop.eup %1171  ;;  %v310_v13 = vadd.f32 %v1170_v55, %v1166_v48  ;;  %v483_v55 = vsub.f32 %v1407_v33, %v1525_v16 }
  0x2a   :  { %v1174_v63 = vpop.eup %1173  ;;  %v302_v6 = vsel %vm218_vm0, %v1172_v60, 0.0  ;;  %v369_v60 = vsel %vm218_vm0, %v358_v26, 0.0  ;;  %v496_v15 = vmul.f32 1.442695, %v486_v39  ;;  %v494_v26 = vmul.f32 1.442695, %v485_v61 }
  0x2b   :  { %v311_v21 = vsel %vm218_vm0, %v1174_v63, 0.0  ;;  %v303_v35 = vadd.f32 %v302_v6, %v301_v0  ;;  %v488_v63 = vmul.f32 1.442695, %v482_v25  ;;  %v667_v0 = vmax.f32 %v1546_v32, %v1512_v62 }
  0x2c   :  { %v312_v48 = vadd.f32 %v311_v21, %v310_v13  ;;  %v361_v13 = vadd.f32 %v360_v52, %v359_v38  ;;  %v660_v21 = vrot.slane %v659_v47, 4  ;;  %v370_v23 = vadd.f32 %v369_v60, %v368_v53 }
  0x2d   :  { %v304_v6 = vrot.slane %v303_v35, 4  ;;  %v490_v25 = vmul.f32 1.442695, %v483_v55  ;;  %v399_v62 = vsel %vm393_vm7, %v1348_v7, 0.0  ;;  %1175 = vpow2.f32 %v488_v63 }
  0x2e   :  { %v313_v22 = vrot.slane %v312_v48, 4  ;;  %1177 = vpow2.f32 %v492_v3  ;;  %v401_v38 = vsel %vm395_vm8, %v1359_v10, 0.0  ;;  %v403_v7 = vsel %vm397_vm9, %v1338_v4, 0.0  ;;  %v1579_v10 = vld [vmem:[%s2120_s4 + $0x78] sm:$0xff] }
  0x2f   :  { %v305_v31 = vadd.f32 %v304_v6, %v303_v35  ;;  %1179 = vpow2.f32 %v496_v15  ;;  %v362_v52 = vrot.slane %v361_v13, 4  ;;  %v400_v53 = vsel %vm394_vm10, %v1353_v8, 0.0 }
  0x30   :  { %v314_v39 = vadd.f32 %v313_v22, %v312_v48  ;;  %1181 = vpow2.f32 %v490_v25  ;;  %v402_v55 = vsel %vm396_vm11, %v1364_v11, 0.0  ;;  %v371_v60 = vrot.slane %v370_v23, 4 }
  0x31   :  { %1183 = vpow2.f32 %v494_v26  ;;  %v404_v35 = vsel %vm398_vm12, %v1343_v5, 0.0  ;;  %v405_v61 = vadd.f32 %v401_v38, %v399_v62  ;;  %v250_v4 = vrot.slane %v1386_v19, %v1489_v50 }
  0x32   :  { %1185 = vpow2.f32 %v498_v28  ;;  %v306_v57 = vrot.slane %v305_v31, 2  ;;  %v406_v48 = vsel %vm218_vm0, %v403_v7, 0.0  ;;  %v527_v8 = vrot.slane %v1452_v17, %v1486_v49 }
  0x33   :  { %v315_v11 = vrot.slane %v314_v39, 2  ;;  %v414_v63 = vadd.f32 %v402_v55, %v400_v53  ;;  %v531_v5 = vrot.slane %v1452_v17, %v1499_v54  ;;  %v415_v19 = vsel %vm218_vm0, %v404_v35, 0.0 }
  0x34   :  { %v661_v50 = vmax.f32 %v659_v47, %v660_v21  ;;  %v668_v3 = vmax.f32 %v667_v0, %v1579_v10  ;;  %v1597_v6 = vadd.f32 %v362_v52, %v361_v13  ;;  %v1599_v15 = vadd.f32 %v371_v60, %v370_v23 }
  0x35   :  { %v1601_v22 = vadd.f32 %v406_v48, %v405_v61  ;;  %v307_v25 = vadd.f32 %v306_v57, %v305_v31  ;;  %v535_v17 = vrot.slane %v527_v8, %v1486_v49  ;;  %v1605_v36 = vsub.f32 %v1373_v14, %v250_v4 }
  0x36   :  { %v316_v58 = vadd.f32 %v315_v11, %v314_v39  ;;  %v1607_v44 = vadd.f32 %v415_v19, %v414_v63  ;;  %v539_v62 = vrot.slane %v531_v5, %v1486_v49  ;;  %v1611_v47 = vsub.f32 1.0, %v1593_v59 }
  0x37   :  { %v662_v0 = vrot.slane %v661_v50, 2  ;;  %v669_v13 = vrot.slane %v668_v3, 4  ;;  %v717_v21 = vfloor.f32 %v1590_v2  ;;  %v364_v26 = vrot.slane %v1597_v6, 2 }
  0x38   :  { %v373_v28 = vrot.slane %v1599_v15, 2  ;;  %v408_v14 = vrot.slane %v1601_v22, 4  ;;  %v308_v39 = vrot.slane %v307_v25, 1  ;;  %vm540_vm13 = vcmp.eq.s32.totalorder %v1333_v1, %v535_v17 }
  0x39   :  { %vm542_vm14 = vcmp.eq.s32.totalorder %v1470_v37, %v535_v17  ;;  %v317_v52 = vrot.slane %v316_v58, 1  ;;  %v417_v53 = vrot.slane %v1607_v44, 4  ;;  %vm541_vm15 = vcmp.eq.s32.totalorder %v1333_v1, %v539_v62 }
  0x3a   :  { %v1176_v23 = vpop.eup %1175  ;;  %vm544_vm1 = vcmp.eq.s32.totalorder %v1473_v40, %v535_v17  ;;  %vm543_vm2 = vcmp.eq.s32.totalorder %v1470_v37, %v539_v62  ;;  %vm545_vm3 = vcmp.eq.s32.totalorder %v1473_v40, %v539_v62  ;;  %v577_v60 = vrot.slane %v1476_v41, %v1499_v54 }
  0x3b   :  { %v1178_v38 = vpop.eup %1177  ;;  %v663_v35 = vmax.f32 %v661_v50, %v662_v0  ;;  %v546_v57 = vsel %vm540_vm13, %v1393_v24, 0.0  ;;  %v548_v48 = vsel %vm542_vm14, %v1412_v34, 0.0  ;;  %v670_v8 = vmax.f32 %v668_v3, %v669_v13 }
  0x3c   :  { %v1180_v7 = vpop.eup %1179  ;;  %v500_v4 = vadd.f32 %v1178_v38, %v1176_v23  ;;  %v309_v63 = vadd.f32 %v308_v39, %v307_v25  ;;  %v550_v19 = vsel %vm544_vm1, %v1381_v18, 0.0  ;;  %v581_v17 = vrot.slane %v573_v29, %v1486_v49 }
  0x3d   :  { %v1182_v55 = vpop.eup %1181  ;;  %v501_v5 = vsel %vm218_vm0, %v1180_v7, 0.0  ;;  %v318_v31 = vadd.f32 %v317_v52, %v316_v58  ;;  %v547_v41 = vsel %vm541_vm15, %v1407_v33, 0.0  ;;  %v549_v50 = vsel %vm543_vm2, %v1421_v43, 0.0 }
  0x3e   :  { %v1184_v61 = vpop.eup %1183  ;;  %v671_v0 = vrot.slane %v670_v8, 2  ;;  %v551_v3 = vsel %vm545_vm3, %v1401_v27, 0.0  ;;  %v585_v25 = vrot.slane %v577_v60, %v1486_v49  ;;  %v664_v13 = vrot.slane %v663_v35, 1 }
  0x3f   :  { %v1186_v11 = vpop.eup %1185  ;;  %v509_v23 = vadd.f32 %v1184_v61, %v1182_v55  ;;  %v502_v38 = vadd.f32 %v501_v5, %v500_v4  ;;  %v552_v39 = vadd.f32 %v548_v48, %v546_v57  ;;  %v553_v29 = vsel %vm218_vm0, %v550_v19, 0.0 }
  0x40   :  { %v510_v58 = vsel %vm218_vm0, %v1186_v11, 0.0  ;;  %1187 = vlog2.f32 %v309_v63  ;;  %v561_v7 = vadd.f32 %v549_v50, %v547_v41  ;;  %vm586_vm4 = vcmp.eq.s32.totalorder %v1333_v1, %v581_v17 }
  0x41   :  { %vm588_vm5 = vcmp.eq.s32.totalorder %v1470_v37, %v581_v17  ;;  %1189 = vlog2.f32 %v318_v31  ;;  %v562_v52 = vsel %vm218_vm0, %v551_v3, 0.0  ;;  %vm590_vm6 = vcmp.eq.s32.totalorder %v1473_v40, %v581_v17 }
  0x42   :  { %v672_v62 = vmax.f32 %v670_v8, %v671_v0  ;;  %v511_v55 = vadd.f32 %v510_v58, %v509_v23  ;;  %vm587_vm7 = vcmp.eq.s32.totalorder %v1333_v1, %v585_v25  ;;  %vm589_vm8 = vcmp.eq.s32.totalorder %v1470_v37, %v585_v25 }
  0x43   :  { %v1653_v60 = vmax.f32 %v663_v35, %v664_v13  ;;  %v503_v61 = vrot.slane %v502_v38, 4  ;;  %vm591_vm9 = vcmp.eq.s32.totalorder %v1473_v40, %v585_v25  ;;  %v592_v4 = vsel %vm586_vm4, %v1393_v24, 0.0 }
  0x44   :  { %v594_v57 = vsel %vm588_vm5, %v1412_v34, 0.0  ;;  %v409_v31 = vadd.f32 %v408_v14, %v1601_v22  ;;  %v418_v48 = vadd.f32 %v417_v53, %v1607_v44  ;;  %v554_v11 = vadd.f32 %v553_v29, %v552_v39 }
  0x45   :  { %v596_v8 = vsel %vm590_vm6, %v1381_v18, 0.0  ;;  %v563_v63 = vadd.f32 %v562_v52, %v561_v7  ;;  %v593_v5 = vsel %vm587_vm7, %v1407_v33, 0.0  ;;  %v595_v35 = vsel %vm589_vm8, %v1421_v43, 0.0 }
  0x46   :  { %v673_v19 = vrot.slane %v672_v62, 1  ;;  %v512_v17 = vrot.slane %v511_v55, 4  ;;  %v597_v41 = vsel %vm591_vm9, %v1401_v27, 0.0  ;;  %v598_v50 = vadd.f32 %v594_v57, %v592_v4 }
  0x47   :  { %v675_v24 = vsub.f32 %v1481_v42, %v1653_v60  ;;  %v504_v34 = vadd.f32 %v503_v61, %v502_v38  ;;  %v599_v22 = vsel %vm218_vm0, %v596_v8, 0.0  ;;  %v677_v18 = vsub.f32 %v1530_v20, %v1653_v60 }
  0x48   :  { %v1667_v44 = vmax.f32 %v672_v62, %v673_v19  ;;  %v433_v33 = vrot.slane %v1593_v59, %v1449_v12  ;;  %v555_v43 = vrot.slane %v554_v11, 4  ;;  %v607_v14 = vadd.f32 %v595_v35, %v593_v5 }
  0x49   :  { %v679_v27 = vsub.f32 %v1462_v30, %v1653_v60  ;;  %v365_v53 = vadd.f32 %v364_v26, %v1597_v6  ;;  %v410_v0 = vrot.slane %v409_v31, 2  ;;  %v419_v23 = vrot.slane %v418_v48, 2 }
  0x4a   :  { %v608_v3 = vsel %vm218_vm0, %v597_v41, 0.0  ;;  %v513_v25 = vadd.f32 %v512_v17, %v511_v55  ;;  %v564_v13 = vrot.slane %v563_v63, 4  ;;  %v600_v38 = vadd.f32 %v599_v22, %v598_v50 }
  0x4b   :  { %v681_v58 = vmul.f32 1.442695, %v675_v24  ;;  %v374_v39 = vadd.f32 %v373_v28, %v1599_v15  ;;  %v505_v29 = vrot.slane %v504_v34, 2  ;;  %v676_v7 = vsub.f32 %v1546_v32, %v1667_v44 }
  0x4c   :  { %v685_v52 = vmul.f32 1.442695, %v677_v18  ;;  %v556_v62 = vadd.f32 %v555_v43, %v554_v11  ;;  %v609_v61 = vadd.f32 %v608_v3, %v607_v14  ;;  %v678_v6 = vsub.f32 %v1579_v10, %v1667_v44 }
  0x4d   :  { %v689_v26 = vmul.f32 1.442695, %v679_v27  ;;  %v1188_v4 = vpop.eup %1187  ;;  %v366_v55 = vrot.slane %v365_v53, 1  ;;  %v411_v57 = vadd.f32 %v410_v0, %v409_v31  ;;  %v420_v8 = vadd.f32 %v419_v23, %v418_v48 }
  0x4e   :  { %v680_v5 = vsub.f32 %v1494_v51, %v1667_v44  ;;  %v1190_v35 = vpop.eup %1189  ;;  %v514_v15 = vrot.slane %v513_v25, 2  ;;  %v565_v28 = vadd.f32 %v564_v13, %v563_v63  ;;  %v601_v19 = vrot.slane %v600_v38, 4 }
  0x4f   :  { %1191 = vpow2.f32 %v681_v58  ;;  %v506_v17 = vadd.f32 %v505_v29, %v504_v34  ;;  %v683_v41 = vmul.f32 1.442695, %v676_v7  ;;  %v1151_v11 = vtrunc.f32 %v717_v21 }
  0x50   :  { %1193 = vpow2.f32 %v685_v52  ;;  %v557_v50 = vrot.slane %v556_v62, 2  ;;  %v610_v24 = vrot.slane %v609_v61, 4  ;;  %v687_v22 = vmul.f32 1.442695, %v678_v6 }
  0x51   :  { %1195 = vpow2.f32 %v689_v26  ;;  %v320_v31 = vmul.f32 0.6931472, %v1188_v4  ;;  %v375_v48 = vrot.slane %v374_v39, 1  ;;  %v412_v18 = vrot.slane %v411_v57, 1 }
  0x52   :  { %v691_v43 = vmul.f32 1.442695, %v680_v5  ;;  %v367_v14 = vadd.f32 %v366_v55, %v365_v53  ;;  %v515_v27 = vadd.f32 %v514_v15, %v513_v25  ;;  %v566_v0 = vrot.slane %v565_v28, 2 }
  0x53   :  { %v602_v63 = vadd.f32 %v601_v19, %v600_v38  ;;  %v322_v23 = vmul.f32 0.6931472, %v1190_v35  ;;  %v507_v3 = vrot.slane %v506_v17, 1  ;;  %1197 = vpow2.f32 %v683_v41 }
  0x54   :  { %v1152_v34 = vcvt.f32.s32 %v1151_v11  ;;  %v421_v13 = vrot.slane %v420_v8, 1  ;;  %v558_v58 = vadd.f32 %v557_v50, %v556_v62  ;;  %v611_v29 = vadd.f32 %v610_v24, %v609_v61 }
  0x55   :  { %1199 = vpow2.f32 %v687_v22  ;;  %v323_v7 = vadd.f32 %v320_v31, %v1425_v45  ;;  %v413_v52 = vadd.f32 %v412_v18, %v411_v57  ;;  %v1692_v6 = vsub.s32 6, %v1333_v1 }
  0x56   :  { %1201 = vpow2.f32 %v691_v43  ;;  %v446_v53 = vrot.slane %v1611_v47, %v1446_v9  ;;  %v516_v25 = vrot.slane %v515_v27, 1  ;;  %v567_v38 = vadd.f32 %v566_v0, %v565_v28 }
  0x57   :  { %v603_v26 = vrot.slane %v602_v63, 2  ;;  %v324_v4 = vadd.f32 %v322_v23, %v1427_v46  ;;  %v376_v55 = vadd.f32 %v375_v48, %v374_v39  ;;  %v508_v5 = vadd.f32 %v507_v3, %v506_v17 }
  0x58   :  { %v726_v62 = vrot.slane %v1152_v34, %v1449_v12  ;;  %v422_v61 = vadd.f32 %v421_v13, %v420_v8  ;;  %v450_v45 = vrot.slane %v1611_v47, %v1449_v12  ;;  %v559_v57 = vrot.slane %v558_v58, 1 }
  0x59   :  { %v612_v35 = vrot.slane %v611_v29, 2  ;;  %v423_v15 = vsub.f32 %v323_v7, %v367_v14  ;;  %v440_v19 = vsub.f32 %v323_v7, %v413_v52  ;;  %v730_v28 = vrot.slane %v1152_v34, %v1692_v6 }
  0x5a   :  { %v517_v11 = vadd.f32 %v516_v25, %v515_v27  ;;  %v568_v50 = vrot.slane %v567_v38, 1  ;;  %v604_v46 = vadd.f32 %v603_v26, %v602_v63  ;;  %v424_v8 = vsub.f32 %v324_v4, %v376_v55 }
  0x5b   :  { %1203 = vlog2.f32 %v508_v5  ;;  %v734_v22 = vrot.slane %v726_v62, %v1449_v12  ;;  %v441_v48 = vsub.f32 %v324_v4, %v422_v61  ;;  %v1708_v18 = vadd.f32 %v559_v57, %v558_v58  ;;  %v1745_v62 = vld [vmem:[%s2120_s4 + $0x90] sm:$0xff]  ;;  %v1750_v61 = vld [vmem:[%s2120_s4 + $0xb8] sm:$0x1] }
  0x5c   :  { %v1192_v17 = vpop.eup %1191  ;;  %v1710_v43 = vadd.f32 %v612_v35, %v611_v29  ;;  %v2124_v0 = vrot.slane %v1593_v59, %v1446_v9  ;;  %v453_v23 = vmul.f32 %v446_v53, %v440_v19  ;;  %v720_v3 = vadd.f32 1.0, %v717_v21  ;;  %v1763_v35 = vld [vmem:[%s2120_s4 + $0x98] sm:$0xff] }
  0x5d   :  { %v1194_v31 = vpop.eup %1193  ;;  %v738_v13 = vrot.slane %v730_v28, %v1449_v12  ;;  %1205 = vlog2.f32 %v517_v11  ;;  %v1720_v7 = vadd.f32 %v568_v50, %v567_v38  ;;  %v605_v58 = vrot.slane %v604_v46, 1  ;;  %v1772_v28 = vld [vmem:[%s2120_s4 + $0xa0] sm:$0xff] }
  0x5e   :  { %v1196_v27 = vpop.eup %1195  ;;  %v436_v63 = vmul.f32 %v2124_v0, %v423_v15  ;;  %v719_v29 = vadd.s32 1, %v1152_v34  ;;  %v437_v52 = vmul.f32 %v433_v33, %v424_v8  ;;  %v693_v25 = vadd.f32 %v1194_v31, %v1192_v17  ;;  %v1733_v34 = vld [vmem:[%s2120_s4 + $0xb0] sm:$0x1]  ;;  %v1782_v8 = vld [vmem:[%s2120_s4 + $0xa8] sm:$0xff] }
  0x5f   :  { %vm739_vm10 = vcmp.eq.s32.totalorder %v1333_v1, %v734_v22  ;;  %vm741_vm11 = vcmp.eq.s32.totalorder %v1470_v37, %v734_v22  ;;  %v454_v26 = vmul.f32 %v450_v45, %v441_v48  ;;  %v614_v21 = vrot.slane %v1710_v43, 1 }
  0x60   :  { %v1198_v53 = vpop.eup %1197  ;;  %v694_v4 = vsel %vm218_vm0, %v1196_v27, 0.0  ;;  %vm743_vm12 = vcmp.eq.s32.totalorder %v1473_v40, %v734_v22  ;;  %v1735_v33 = vadd.f32 %v453_v23, %v436_v63  ;;  %v1738_v55 = vsub.f32 %v720_v3, %v1590_v2 }
  0x61   :  { %vm740_vm13 = vcmp.eq.s32.totalorder %v1333_v1, %v738_v13  ;;  %v849_v5 = vmax.f32 %v1605_v36, 0.0  ;;  %vm742_vm14 = vcmp.eq.s32.totalorder %v1470_v37, %v738_v13  ;;  %v745_v2 = vsel %vm739_vm10, %v1481_v42, 0.0 }
  0x62   :  { %v1200_v38 = vpop.eup %1199  ;;  %v747_v36 = vsel %vm741_vm11, %v1530_v20, 0.0  ;;  %v772_v57 = vrot.slane %v719_v29, %v1449_v12  ;;  %v695_v15 = vadd.f32 %v694_v4, %v693_v25  ;;  %vm744_vm15 = vcmp.eq.s32.totalorder %v1473_v40, %v738_v13 }
  0x63   :  { %v1202_v45 = vpop.eup %1201  ;;  %v749_v19 = vsel %vm743_vm12, %v1462_v30, 0.0  ;;  %v858_v11 = vsel %vm218_vm0, %v1733_v34, -inf  ;;  %v702_v50 = vadd.f32 %v1200_v38, %v1198_v53  ;;  %v746_v17 = vsel %vm740_vm13, %v1546_v32, 0.0 }
  0x64   :  { %v859_v22 = vmax.f32 %v1745_v62, %v858_v11  ;;  %v867_v31 = vsel %vm218_vm0, %v1750_v61, -inf  ;;  %v703_v48 = vsel %vm218_vm0, %v1202_v45, 0.0  ;;  %v748_v27 = vsel %vm742_vm14, %v1579_v10, 0.0 }
  0x65   :  { %v751_v0 = vadd.f32 %v747_v36, %v745_v2  ;;  %v868_v63 = vmax.f32 %v1763_v35, %v867_v31  ;;  %v750_v23 = vsel %vm744_vm15, %v1494_v51, 0.0  ;;  %v752_v3 = vsel %vm218_vm0, %v749_v19, 0.0 }
  0x66   :  { %v776_v25 = vrot.slane %v719_v29, %v1692_v6  ;;  %v860_v53 = vmax.f32 %v859_v22, %v1772_v28  ;;  %v1796_v4 = vadd.f32 %v605_v58, %v604_v46  ;;  %v696_v38 = vrot.slane %v695_v15, 4 }
  0x67   :  { %v780_v45 = vrot.slane %v772_v57, %v1449_v12  ;;  %v869_v11 = vmax.f32 %v868_v63, %v1782_v8  ;;  %v1800_v14 = vadd.f32 %v454_v26, %v437_v52  ;;  %v704_v2 = vadd.f32 %v703_v48, %v702_v50 }
  0x68   :  { %v1204_v13 = vpop.eup %1203  ;;  %v760_v36 = vadd.f32 %v748_v27, %v746_v17  ;;  %v861_v31 = vrot.slane %v860_v53, 4  ;;  %v753_v24 = vadd.f32 %v752_v3, %v751_v0  ;;  %v761_v19 = vsel %vm218_vm0, %v750_v23, 0.0 }
  0x69   :  { %v1803_v39 = vmin.f32 %v849_v5, 15.99  ;;  %v870_v29 = vrot.slane %v869_v11, 4  ;;  %v1806_v46 = vadd.f32 %v614_v21, %v1710_v43  ;;  %v784_v57 = vrot.slane %v776_v25, %v1449_v12 }
  0x6a   :  { %v862_v22 = vmax.f32 %v860_v53, %v861_v31  ;;  %v1206_v63 = vpop.eup %1205  ;;  %v519_v52 = vmul.f32 0.6931472, %v1204_v13  ;;  %v697_v26 = vadd.f32 %v696_v38, %v695_v15  ;;  %vm785_vm1 = vcmp.eq.s32.totalorder %v1333_v1, %v780_v45 }
  0x6b   :  { %v871_v50 = vmax.f32 %v869_v11, %v870_v29  ;;  %v705_v17 = vrot.slane %v704_v2, 4  ;;  %v762_v48 = vadd.f32 %v761_v19, %v760_v36  ;;  %vm787_vm2 = vcmp.eq.s32.totalorder %v1470_v37, %v780_v45 }
  0x6c   :  { %v863_v5 = vrot.slane %v862_v22, 2  ;;  %v754_v27 = vrot.slane %v753_v24, 4  ;;  %vm789_vm3 = vcmp.eq.s32.totalorder %v1473_v40, %v780_v45  ;;  %v2123_v21 = vfloor.f32 %v1803_v39 }
  0x6d   :  { %v872_v43 = vrot.slane %v871_v50, 2  ;;  %v521_v0 = vmul.f32 0.6931472, %v1206_v63  ;;  %vm786_vm4 = vcmp.eq.s32.totalorder %v1333_v1, %v784_v57  ;;  %vm788_vm5 = vcmp.eq.s32.totalorder %v1470_v37, %v784_v57 }
  0x6e   :  { %v864_v15 = vmax.f32 %v862_v22, %v863_v5  ;;  %v698_v23 = vrot.slane %v697_v26, 2  ;;  %vm790_vm6 = vcmp.eq.s32.totalorder %v1473_v40, %v784_v57  ;;  %v791_v3 = vsel %vm785_vm1, %v1481_v42, 0.0 }
  0x6f   :  { %v873_v25 = vmax.f32 %v871_v50, %v872_v43  ;;  %v706_v53 = vadd.f32 %v705_v17, %v704_v2  ;;  %v793_v38 = vsel %vm787_vm2, %v1530_v20, 0.0  ;;  %v795_v11 = vsel %vm789_vm3, %v1462_v30, 0.0 }
  0x70   :  { %v865_v13 = vrot.slane %v864_v15, 1  ;;  %v755_v36 = vadd.f32 %v754_v27, %v753_v24  ;;  %v763_v31 = vrot.slane %v762_v48, 4  ;;  %v1153_v29 = vtrunc.f32 %v2123_v21 }
  0x71   :  { %v874_v19 = vrot.slane %v873_v25, 1  ;;  %v792_v22 = vsel %vm786_vm4, %v1546_v32, 0.0  ;;  %v794_v57 = vsel %vm788_vm5, %v1579_v10, 0.0  ;;  %v796_v45 = vsel %vm790_vm6, %v1494_v51, 0.0 }
  0x72   :  { %v1827_v42 = vmax.f32 %v864_v15, %v865_v13  ;;  %v699_v2 = vadd.f32 %v698_v23, %v697_v26  ;;  %v797_v63 = vadd.f32 %v793_v38, %v791_v3  ;;  %v798_v20 = vsel %vm218_vm0, %v795_v11, 0.0 }
  0x73   :  { %v1830_v30 = vmax.f32 %v873_v25, %v874_v19  ;;  %v707_v24 = vrot.slane %v706_v53, 2  ;;  %v1154_v5 = vcvt.f32.s32 %v1153_v29  ;;  %v806_v27 = vadd.f32 %v794_v57, %v792_v22 }
  0x74   :  { %v876_v50 = vsub.f32 %v1745_v62, %v1827_v42  ;;  %v878_v17 = vsub.f32 %v1772_v28, %v1827_v42  ;;  %v880_v32 = vsub.f32 %v1733_v34, %v1827_v42  ;;  %v1845_v23 = vsub.s32 7, %v1333_v1 }
  0x75   :  { %v877_v51 = vsub.f32 %v1763_v35, %v1830_v30  ;;  %v879_v10 = vsub.f32 %v1782_v8, %v1830_v30  ;;  %v881_v26 = vsub.f32 %v1750_v61, %v1830_v30  ;;  %v799_v3 = vadd.f32 %v798_v20, %v797_v63 }
  0x76   :  { %v882_v43 = vmul.f32 1.442695, %v876_v50  ;;  %v886_v15 = vmul.f32 1.442695, %v878_v17  ;;  %v807_v25 = vsel %vm218_vm0, %v796_v45, 0.0  ;;  %v700_v13 = vrot.slane %v699_v2, 1 }
  0x77   :  { %v884_v38 = vmul.f32 1.442695, %v877_v51  ;;  %v888_v11 = vmul.f32 1.442695, %v879_v10  ;;  %v708_v19 = vadd.f32 %v707_v24, %v706_v53  ;;  %v890_v21 = vmul.f32 1.442695, %v880_v32 }
  0x78   :  { %1207 = vpow2.f32 %v882_v43  ;;  %v892_v58 = vmul.f32 1.442695, %v881_v26  ;;  %v920_v41 = vadd.s32 1, %v1154_v5  ;;  %v927_v29 = vrot.slane %v1154_v5, %v1499_v54 }
  0x79   :  { %1209 = vpow2.f32 %v884_v38  ;;  %v1850_v22 = vadd.f32 %v519_v52, %v1502_v56  ;;  %v764_v57 = vadd.f32 %v763_v31, %v762_v48  ;;  %v931_v63 = vrot.slane %v1154_v5, %v1845_v23 }
  0x7a   :  { %1211 = vpow2.f32 %v886_v15  ;;  %v756_v20 = vrot.slane %v755_v36, 2  ;;  %v800_v45 = vrot.slane %v799_v3, 4  ;;  %v808_v50 = vadd.f32 %v807_v25, %v806_v27 }
  0x7b   :  { %1213 = vpow2.f32 %v888_v11  ;;  %v1854_v53 = vadd.f32 %v521_v0, %v1525_v16  ;;  %v701_v24 = vadd.f32 %v700_v13, %v699_v2  ;;  %v709_v17 = vrot.slane %v708_v19, 1 }
  0x7c   :  { %1215 = vpow2.f32 %v890_v21  ;;  %v935_v56 = vrot.slane %v927_v29, %v1499_v54  ;;  %v973_v52 = vrot.slane %v920_v41, %v1499_v54  ;;  %v616_v48 = vsub.f32 %v1850_v22, %v1708_v18 }
  0x7d   :  { %1217 = vpow2.f32 %v892_v58  ;;  %v765_v31 = vrot.slane %v764_v57, 2  ;;  %v939_v51 = vrot.slane %v931_v63, %v1499_v54  ;;  %v977_v16 = vrot.slane %v920_v41, %v1845_v23 }
  0x7e   :  { %v1866_v21 = vadd.f32 %v756_v20, %v755_v36  ;;  %v1868_v2 = vadd.f32 %v800_v45, %v799_v3  ;;  %v809_v58 = vrot.slane %v808_v50, 4  ;;  %v617_v10 = vsub.f32 %v1854_v53, %v1720_v7 }
  0x7f   :  { %v710_v5 = vadd.f32 %v709_v17, %v708_v19  ;;  %1219 = vlog2.f32 %v701_v24  ;;  %vm940_vm7 = vcmp.eq.s32.totalorder %v1333_v1, %v935_v56  ;;  %vm942_vm8 = vcmp.eq.s32.totalorder %v1470_v37, %v935_v56  ;;  %v1909_v17 = vld [vmem:[%s2117_s1] sm:$0xff] }
  0x80   :  { %vm944_vm9 = vcmp.eq.s32.totalorder %v1473_v40, %v935_v56  ;;  %v981_v41 = vrot.slane %v973_v52, %v1499_v54  ;;  %v1878_v36 = vadd.f32 %v765_v31, %v764_v57  ;;  %vm941_vm10 = vcmp.eq.s32.totalorder %v1333_v1, %v939_v51  ;;  %v1898_v57 = vld [vmem:[%s2116_s0] sm:$0xff] }
  0x81   :  { %vm943_vm11 = vcmp.eq.s32.totalorder %v1470_v37, %v939_v51  ;;  %v985_v27 = vrot.slane %v977_v16, %v1499_v54  ;;  %v758_v43 = vrot.slane %v1866_v21, 1  ;;  %v802_v15 = vrot.slane %v1868_v2, 2 }
  0x82   :  { %v1885_v3 = vadd.f32 %v809_v58, %v808_v50  ;;  %vm945_vm12 = vcmp.eq.s32.totalorder %v1473_v40, %v939_v51  ;;  %1221 = vlog2.f32 %v710_v5  ;;  %v946_v25 = vsel %vm940_vm7, %v1745_v62, 0.0 }
  0x83   :  { %v948_v38 = vsel %vm942_vm8, %v1772_v28, 0.0  ;;  %v950_v11 = vsel %vm944_vm9, %v1733_v34, 0.0  ;;  %v947_v19 = vsel %vm941_vm10, %v1763_v35, 0.0  ;;  %v949_v29 = vsel %vm943_vm11, %v1782_v8, 0.0 }
  0x84   :  { %vm986_vm13 = vcmp.eq.s32.totalorder %v1333_v1, %v981_v41  ;;  %vm988_vm14 = vcmp.eq.s32.totalorder %v1470_v37, %v981_v41  ;;  %v951_v20 = vsel %vm945_vm12, %v1750_v61, 0.0  ;;  %vm987_vm15 = vcmp.eq.s32.totalorder %v1333_v1, %v985_v27 }
  0x85   :  { %v1208_v13 = vpop.eup %1207  ;;  %vm989_vm1 = vcmp.eq.s32.totalorder %v1470_v37, %v985_v27  ;;  %vm990_vm2 = vcmp.eq.s32.totalorder %v1473_v40, %v981_v41  ;;  %v952_v50 = vadd.f32 %v948_v38, %v946_v25  ;;  %v953_v24 = vsel %vm218_vm0, %v950_v11, 0.0 }
  0x86   :  { %v1210_v63 = vpop.eup %1209  ;;  %vm991_vm3 = vcmp.eq.s32.totalorder %v1473_v40, %v985_v27  ;;  %v35_v56 = vrot.slane %v1909_v17, 6  ;;  %v992_v51 = vsel %vm986_vm13, %v1745_v62, 0.0  ;;  %v994_v16 = vsel %vm988_vm14, %v1772_v28, 0.0 }
  0x87   :  { %v1212_v45 = vpop.eup %1211  ;;  %v30_v58 = vrot.slane %v1898_v57, 6  ;;  %v993_v38 = vsel %vm987_vm15, %v1763_v35, 0.0  ;;  %v995_v11 = vsel %vm989_vm1, %v1782_v8, 0.0  ;;  %v996_v62 = vsel %vm990_vm2, %v1733_v34, 0.0 }
  0x88   :  { %v1214_v52 = vpop.eup %1213  ;;  %v894_v31 = vadd.f32 %v1212_v45, %v1208_v13  ;;  %v961_v28 = vadd.f32 %v949_v29, %v947_v19  ;;  %v962_v32 = vsel %vm218_vm0, %v951_v20, 0.0  ;;  %v998_v26 = vadd.f32 %v994_v16, %v992_v51 }
  0x89   :  { %v1216_v5 = vpop.eup %1215  ;;  %v903_v25 = vadd.f32 %v1214_v52, %v1210_v63  ;;  %v997_v63 = vsel %vm991_vm3, %v1750_v61, 0.0  ;;  %v1935_v37 = vsub.f32 %v1909_v17, %v35_v56  ;;  %v999_v34 = vsel %vm218_vm0, %v996_v62, 0.0 }
  0x8a   :  { %v1218_v13 = vpop.eup %1217  ;;  %v895_v45 = vsel %vm218_vm0, %v1216_v5, 0.0  ;;  %v1007_v41 = vadd.f32 %v995_v11, %v993_v38  ;;  %v1939_v5 = vsub.f32 %v1898_v57, %v30_v58  ;;  %v2125_v40 = vrot.slane %v1593_v59, %v1486_v49 }
  0x8b   :  { %v896_v52 = vadd.f32 %v895_v45, %v894_v31  ;;  %v904_v35 = vsel %vm218_vm0, %v1218_v13, 0.0  ;;  %v811_v27 = vrot.slane %v1885_v3, 2  ;;  %v1008_v20 = vsel %vm218_vm0, %v997_v63, 0.0 }
  0x8c   :  { %v905_v8 = vadd.f32 %v904_v35, %v903_v25  ;;  %v1220_v19 = vpop.eup %1219  ;;  %v628_v61 = vmul.f32 %v2125_v40, %v616_v48  ;;  %v767_v31 = vrot.slane %v1878_v36, 1  ;;  %v954_v16 = vadd.f32 %v953_v24, %v952_v50 }
  0x8d   :  { %v897_v29 = vrot.slane %v896_v52, 4  ;;  %v963_v25 = vadd.f32 %v962_v32, %v961_v28  ;;  %v759_v38 = vadd.f32 %v758_v43, %v1866_v21  ;;  %v1000_v62 = vadd.f32 %v999_v34, %v998_v26 }
  0x8e   :  { %v906_v51 = vrot.slane %v905_v8, 4  ;;  %v1952_v18 = vadd.f32 1e-07, %v1935_v37  ;;  %v803_v13 = vadd.f32 %v802_v15, %v1868_v2  ;;  %v1009_v45 = vadd.f32 %v1008_v20, %v1007_v41 }
  0x8f   :  { %v898_v11 = vadd.f32 %v897_v29, %v896_v52  ;;  %v1956_v35 = vadd.f32 1e-07, %v1939_v5  ;;  %v1222_v63 = vpop.eup %1221  ;;  %v712_v40 = vmul.f32 0.6931472, %v1220_v19  ;;  %v812_v0 = vadd.f32 %v811_v27, %v1885_v3 }
  0x90   :  { %v907_v48 = vadd.f32 %v906_v51, %v905_v8  ;;  %v75_v32 = vrot.slane %v35_v56, 4  ;;  %v955_v21 = vrot.slane %v954_v16, 4  ;;  %v964_v43 = vrot.slane %v963_v25, 4 }
  0x91   :  { %v899_v50 = vrot.slane %v898_v11, 2  ;;  %v78_v26 = vrot.slane %v30_v58, 4  ;;  %v1001_v52 = vrot.slane %v1000_v62, 4  ;;  %1223 = vrcp.f32 %v1952_v18 }
  0x92   :  { %v908_v24 = vrot.slane %v907_v48, 2  ;;  %v77_v34 = vadd.f32 %v1909_v17, %v75_v32  ;;  %v1010_v15 = vrot.slane %v1009_v45, 4  ;;  %1225 = vrcp.f32 %v1956_v35 }
  0x93   :  { %v900_v28 = vadd.f32 %v899_v50, %v898_v11  ;;  %v80_v8 = vadd.f32 %v78_v26, %v1898_v57  ;;  %v714_v41 = vmul.f32 0.6931472, %v1222_v63  ;;  %v715_v3 = vadd.f32 %v712_v40, %v1653_v60 }
  0x94   :  { %v909_v2 = vadd.f32 %v908_v24, %v907_v48  ;;  %v804_v56 = vrot.slane %v803_v13, 1  ;;  %v956_v29 = vadd.f32 %v955_v21, %v954_v16  ;;  %v965_v58 = vadd.f32 %v964_v43, %v963_v25 }
  0x95   :  { %v901_v19 = vrot.slane %v900_v28, 1  ;;  %v1964_v20 = vsub.f32 %v77_v34, %v80_v8  ;;  %v2126_v51 = vrot.slane %v1593_v59, %v1499_v54  ;;  %v2127_v48 = vsub.f32 %v1850_v22, %v1796_v4 }
  0x96   :  { %v910_v27 = vrot.slane %v909_v2, 1  ;;  %v2128_v60 = vrot.slane %v1611_v47, %v1486_v49  ;;  %v1002_v50 = vadd.f32 %v1001_v52, %v1000_v62  ;;  %v630_v16 = vadd.f32 %v628_v61, %v1735_v33 }
  0x97   :  { %v629_v11 = vmul.f32 %v2126_v51, %v617_v10  ;;  %v902_v40 = vadd.f32 %v901_v19, %v900_v28  ;;  %v768_v25 = vadd.f32 %v767_v31, %v1878_v36  ;;  %v1011_v24 = vadd.f32 %v1010_v15, %v1009_v45 }
  0x98   :  { %v644_v63 = vmul.f32 %v2128_v60, %v2127_v48  ;;  %v911_v32 = vadd.f32 %v910_v27, %v909_v2  ;;  %v805_v7 = vadd.f32 %v804_v56, %v803_v13  ;;  %v813_v21 = vrot.slane %v812_v0, 1 }
  0x99   :  { %v815_v43 = vsub.f32 %v715_v3, %v759_v38  ;;  %1227 = vlog2.f32 %v902_v40  ;;  %v716_v59 = vadd.f32 %v714_v41, %v1667_v44  ;;  %v957_v4 = vrot.slane %v956_v29, 2 }
  0x9a   :  { %1229 = vlog2.f32 %v911_v32  ;;  %v966_v22 = vrot.slane %v965_v58, 2  ;;  %v2129_v10 = vsub.f32 1.0, %v1738_v55  ;;  %v1003_v62 = vrot.slane %v1002_v50, 2 }
  0x9b   :  { %v631_v33 = vadd.f32 %v629_v11, %v1800_v14  ;;  %v2130_v36 = vsub.f32 %v1854_v53, %v1806_v46  ;;  %v2131_v61 = vrot.slane %v1611_v47, %v1499_v54  ;;  %v2132_v38 = vfloor.f32 %v1803_v39 }
  0x9c   :  { %v838_v26 = vrot.slane %v2129_v10, %v1449_v12  ;;  %v1012_v13 = vrot.slane %v1011_v24, 2  ;;  %v646_v45 = vadd.f32 %v644_v63, %v630_v16  ;;  %v814_v28 = vadd.f32 %v813_v21, %v812_v0 }
  0x9d   :  { %v645_v31 = vmul.f32 %v2131_v61, %v2130_v36  ;;  %v921_v44 = vadd.f32 1.0, %v2132_v38  ;;  %v2133_v52 = vrot.slane %v1738_v55, %v1449_v12  ;;  %v832_v2 = vsub.f32 %v715_v3, %v805_v7 }
  0x9e   :  { %v816_v15 = vsub.f32 %v716_v59, %v768_v25  ;;  %v825_v14 = vrot.slane %v1738_v55, %v1692_v6  ;;  %v958_v46 = vadd.f32 %v957_v4, %v956_v29  ;;  %v967_v53 = vadd.f32 %v966_v22, %v965_v58  ;;  %v1224_v47 = vpop.eup %1223 }
  0x9f   :  { %v828_v34 = vmul.f32 %v2133_v52, %v815_v43  ;;  %v1004_v8 = vadd.f32 %v1003_v62, %v1002_v50  ;;  %v647_v41 = vadd.f32 %v645_v31, %v631_v33  ;;  %v2134_v56 = vmov %v2129_v10  ;;  %v1226_v51 = vpop.eup %1225 }
  0xa0   :  { %v842_v19 = vrot.slane %v2134_v56, %v1692_v6  ;;  %v922_v0 = vsub.f32 %v921_v44, %v1803_v39  ;;  %v1013_v27 = vadd.f32 %v1012_v13, %v1011_v24  ;;  %v833_v11 = vsub.f32 %v716_v59, %v814_v28 }
  0xa1   :  { %v830_v12 = vadd.f32 %v828_v34, %v646_v45  ;;  %v845_v3 = vmul.f32 %v838_v26, %v832_v2  ;;  %v1121_v48 = vrot.slane %v1224_v47, 9  ;;  %v829_v60 = vmul.f32 %v825_v14, %v816_v15 }
  0xa2   :  { %v959_v63 = vrot.slane %v958_v46, 1  ;;  %v968_v40 = vrot.slane %v967_v53, 1  ;;  %v1122_v29 = vrot.slane %v1226_v51, 9  ;;  %v1005_v58 = vrot.slane %v1004_v8, 1 }
  0xa3   :  { %v2003_v50 = vmul.f32 %v1121_v48, %v1935_v37  ;;  %v1293_v16 = vmov 1966171168   ;;  %v1014_v55 = vrot.slane %v1013_v27, 1  ;;  %v846_v6 = vmul.f32 %v842_v19, %v833_v11 }
  0xa4   :  { %v191_v25 = vunpack.c.l.s4 %v1293_v16  ;;  %v923_v32 = vsub.f32 1.0, %v922_v0  ;;  %v2006_v39 = vmul.f32 %v1122_v29, %v1939_v5  ;;  %v831_v21 = vadd.f32 %v829_v60, %v647_v41 }
  0xa5   :  { %v2009_v24 = vand.u32 2147483647, %v2003_v50  ;;  %v847_v43 = vadd.f32 %v845_v3, %v830_v12  ;;  %v960_v59 = vadd.f32 %v959_v63, %v958_v46  ;;  %v969_v4 = vadd.f32 %v968_v40, %v967_v53 }
  0xa6   :  { %v1228_v7 = vpop.eup %1227  ;;  %v1006_v26 = vadd.f32 %v1005_v58, %v1004_v8  ;;  %v1022_v62 = vrot.slane %v922_v0, %v1499_v54  ;;  %v1015_v36 = vadd.f32 %v1014_v55, %v1013_v27  ;;  %v1039_v44 = vrot.slane %v923_v32, %v1499_v54 }
  0xa7   :  { %v1230_v22 = vpop.eup %1229  ;;  %v913_v10 = vmul.f32 0.6931472, %v1228_v7  ;;  %vm106_vm4 = vcmp.gt.f32.partialorder %v2009_v24, 2.4142137  ;;  %v114_v31 = vadd.f32 1.0, %v2009_v24  ;;  %v1026_v28 = vrot.slane %v922_v0, %v1845_v23 }
  0xa8   :  { %v915_v33 = vmul.f32 0.6931472, %v1230_v22  ;;  %v110_v61 = vsel %vm106_vm4, %v2009_v24, 1.0  ;;  %v2020_v13 = vand.u32 2147483647, %v2006_v39  ;;  %v1043_v52 = vrot.slane %v923_v32, %v1845_v23 }
  0xa9   :  { %v916_v38 = vadd.f32 %v913_v10, %v1827_v42  ;;  %1231 = vrcp.f32 %v110_v61  ;;  %v2027_v15 = vmax.f32 %v1898_v57, %v1909_v17  ;;  %v848_v54 = vadd.f32 %v846_v6, %v831_v21 }
  0xaa   :  { %v917_v45 = vadd.f32 %v915_v33, %v1830_v30  ;;  %1233 = vrcp.f32 %v114_v31  ;;  %vm138_vm5 = vcmp.gt.f32.partialorder %v2020_v13, 2.4142137  ;;  %v192_v23 = vunpack.c.0.s8 %v191_v25 }
  0xab   :  { %v1016_v34 = vsub.f32 %v916_v38, %v960_v59  ;;  %v1033_v2 = vsub.f32 %v916_v38, %v1006_v26  ;;  %v142_v30 = vsel %vm138_vm5, %v2020_v13, 1.0  ;;  %v146_v41 = vadd.f32 1.0, %v2020_v13 }
  0xac   :  { %v1017_v42 = vsub.f32 %v917_v45, %v969_v4  ;;  %v1034_v14 = vsub.f32 %v917_v45, %v1015_v36  ;;  %1235 = vrcp.f32 %v142_v30  ;;  %v2036_v19 = vmin.f32 %v1898_v57, %v1909_v17 }
  0xad   :  { %v1029_v46 = vmul.f32 %v1022_v62, %v1016_v34  ;;  %v1046_v53 = vmul.f32 %v1039_v44, %v1033_v2  ;;  %v40_v0 = vrot.slane %v2027_v15, 6  ;;  %1237 = vrcp.f32 %v146_v41 }
  0xae   :  { %v1030_v8 = vmul.f32 %v1026_v28, %v1017_v42  ;;  %v1047_v47 = vmul.f32 %v1043_v52, %v1034_v14  ;;  %v2040_v12 = vsub.s32 %v192_v23, %v1333_v1  ;;  %vm107_vm6 = vcmp.gt.f32.partialorder %v2009_v24, 0.41421357  ;;  %v2052_v1 = vld [vmem:[%s2119_s3] sm:$0x3]  ;;  %s1296_s3 = smov [#allocation4]  }
  0xaf   :  { %v1031_v56 = vadd.f32 %v1029_v46, %v847_v43  ;;  %v42_v3 = vsub.f32 %v2036_v19, %v40_v0  ;;  %vm1294_vm7 = vmmov 1   ;;  %v1123_v57 = vadd.f32 -1.0, %v2009_v24  ;;  %s1104_s26 = sshll.u32 %s1296_s3, 4  ;;  %s1105_s26 = int_to_ptr.vmem [resolvable:$true] %s1104_s26 }
  0xb0   :  { %v1032_v27 = vadd.f32 %v1030_v8, %v848_v54  ;;  %vm108_vm8 = vmxor %vm106_vm4, %vm1294_vm7  ;;  %v1117_v29 = vrot.slane %v1956_v35, 9  ;;  %v1118_v55 = vrot.slane %v1952_v18, 9  ;;  %vm139_vm10 = vcmp.gt.f32.partialorder %v2020_v13, 0.41421357  ;;  %s1246_s27 = scalar_lea.vmem %s1105_s26, 16  ;;  %s1250_s28 = scalar_lea.vmem %s1105_s26, 32 }
  0xb1   :  { %v1048_v51 = vadd.f32 %v1046_v53, %v1031_v56  ;;  %v43_v40 = vmax.f32 %v42_v3, 0.0  ;;  %vm2055_vm9 = vmand %vm107_vm6, %vm108_vm8  ;;  %v1126_v35 = vadd.f32 -1.0, %v2020_v13  ;;  %v65_v23 = vrot.slane %v2036_v19, 6  ;;  %p1247_p0 = scmp.ne.s32.totalorder %s1105_s26, %s1246_s27  ;;  %p1251_p1 = scmp.lt.s32.totalorder %s1105_s26, %s1105_s26 }
  0xb2   :  { %v1049_v11 = vadd.f32 %v1047_v47, %v1032_v27  ;;  %vm140_vm11 = vmxor %vm138_vm5, %vm1294_vm7  ;;  %v53_v59 = vmul.f32 %v1117_v29, %v1939_v5  ;;  %v58_v10 = vmul.f32 %v1118_v55, %v1935_v37  ;;  %vm102_vm13 = vcmp.gt.f32.partialorder %v2003_v50, 0.0  ;;  %p1252_p2 = scmp.lt.s32.totalorder %s1250_s28, %s1246_s27 }
  0xb3   :  { %v1116_v43 = vrot.slane %v43_v40, 9  ;;  %vm2076_vm12 = vmand %vm139_vm10, %vm140_vm11  ;;  %v67_v27 = vsub.f32 %v2027_v15, %v65_v23  ;;  %vm134_vm14 = vcmp.gt.f32.partialorder %v2006_v39, 0.0  ;;  %vm101_vm15 = vcmp.lt.f32.partialorder %v2003_v50, 0.0 }
  0xb4   :  { %v1052_v48 = vcombine.low %v1048_v51, %v1049_v11  ;;  %v59_v28 = vadd.f32 %v58_v10, %v53_v59  ;;  %v1295_v51 = vmov 0.0   ;;  %vm133_vm1 = vcmp.lt.f32.partialorder %v2006_v39, 0.0  ;;  %p1253_p3 = por %p1252_p2, %p1251_p1 }
  0xb5   :  { %v48_v45 = vmul.f32 %v1116_v43, %v43_v40  ;;  %v119_v11 = vsel %vm2055_vm9, 0.7853982, %v1295_v51  ;;  %v103_v15 = vsel %vm102_vm13, 1.0, %v1295_v51  ;;  %v135_v58 = vsel %vm134_vm14, 1.0, %v1295_v51 }
  0xb6   :  { %v1232_v17 = vpop.eup %1231  ;;  %v1059_v60 = vrot.slane %v1052_v48, %v2040_v12  ;;  %v120_v19 = vsel %vm106_vm4, 1.5707964, %v119_v11  ;;  %v104_v55 = vsel %vm101_vm15, -1.0, %v103_v15  ;;  %p1254_p4 = pnand %p1253_p3, %p1247_p0 }
  0xb7   :  { %v1234_v63 = vpop.eup %1233  ;;  %v112_v16 = vmul.f32 -1.0, %v1232_v17  ;;  %v60_v42 = vsub.f32 %v59_v28, %v48_v45 }
  0xb8   :  { %v1066_v25 = vrot.slane %v1059_v60, %v2040_v12  ;;  %v116_v6 = vmul.f32 %v1234_v63, %v1123_v57  ;;  %v68_v60 = vmul.f32 %v67_v27, %v67_v27  ;;  %v151_v63 = vsel %vm2076_vm12, 0.7853982, %v1295_v51 }
  0xb9   :  { %v1236_v32 = vpop.eup %1235  ;;  %v61_v8 = vadd.f32 1e-07, %v60_v42 }
  0xba   :  { %v1068_v7 = vmul.f32 %v1066_v25, %v2052_v1  ;;  %v117_v21 = vsel %vm2055_vm9, %v116_v6, %v2009_v24  ;;  %v1238_v62 = vpop.eup %1237  ;;  %v144_v36 = vmul.f32 -1.0, %v1236_v32  ;;  %v1119_v25 = vrot.slane %v68_v60, 9 }
  0xbb   :  { %v118_v18 = vsel %vm106_vm4, %v112_v16, %v117_v21  ;;  %v148_v38 = vmul.f32 %v1238_v62, %v1126_v35  ;;  %1239 = vrcp.f32 %v61_v8  ;;  %v152_v24 = vsel %vm138_vm5, 1.5707964, %v151_v63 }
  0xbc   :  { %v1073_v4 = vrot.slane %v1068_v7, %v1446_v9  ;;  %v1077_v22 = vrot.slane %v1068_v7, %v1486_v49  ;;  %v121_v26 = vmul.f32 %v118_v18, %v118_v18  ;;  %v136_v32 = vsel %vm133_vm1, -1.0, %v135_v58 }
  0xbd   :  { %v149_v37 = vsel %vm2076_vm12, %v148_v38, %v2020_v13  ;;  %v73_v50 = vadd.f32 %v1119_v25, %v68_v60  ;;  %v82_v13 = vmul.f32 %v1964_v20, %v1964_v20 }
  0xbe   :  { %v1080_v61 = vsel %vm218_vm0, %v1073_v4, 0.0  ;;  %v1081_v5 = vsel %vm218_vm0, %v1077_v22, 0.0  ;;  %v122_v31 = vmul.f32 0.080537446, %v121_v26  ;;  %v150_v34 = vsel %vm138_vm5, %v144_v36, %v149_v37 }
  0xbf   :  { %v1082_v44 = vadd.f32 %v1081_v5, %v1080_v61  ;;  %v153_v54 = vmul.f32 %v150_v34, %v150_v34  ;;  %v1120_v33 = vrot.slane %v82_v13, 9 }
  0xc0   :  { %v1124_v52 = vadd.f32 -0.13877685, %v122_v31 }
  0xc1   :  { %1083 = vadd.xlane.f32.xlu0 %v1082_v44  ;;  %v154_v30 = vmul.f32 0.080537446, %v153_v54  ;;  %v87_v36 = vadd.f32 %v1120_v33, %v82_v13 }
  0xc2   :  { %v124_v2 = vmul.f32 %v1124_v52, %v121_v26 }
  0xc3   :  { %v1127_v53 = vadd.f32 -0.13877685, %v154_v30  ;;  %v88_v5 = vmul.f32 0.25, %v87_v36 }
  0xc4   :  { %v125_v14 = vadd.f32 0.19977711, %v124_v2 }
  0xc5   :  { %v156_v41 = vmul.f32 %v1127_v53, %v153_v54 }
  0xc6   :  { %v126_v46 = vmul.f32 %v125_v14, %v121_v26 }
  0xc7   :  { %v157_v0 = vadd.f32 0.19977711, %v156_v41 }
  0xc8   :  { %v1125_v47 = vadd.f32 -0.3333295, %v126_v46  ;;  %v1240_v43 = vpop.eup %1239 }
  0xc9   :  { %v158_v48 = vmul.f32 %v157_v0, %v153_v54  ;;  %v63_v4 = vmul.f32 %v1240_v43, %v48_v45 }
  0xca   :  { %v128_v56 = vmul.f32 %v1125_v47, %v121_v26 }
  0xcb   :  { %v1128_v17 = vadd.f32 -0.3333295, %v158_v48 }
  0xcc   :  { %v129_v3 = vmul.f32 %v128_v56, %v118_v18 }
  0xcd   :  { %v160_v40 = vmul.f32 %v1128_v17, %v153_v54 }
  0xce   :  { %v130_v57 = vadd.f32 %v129_v3, %v118_v18  ;;  %v74_v18 = vadd.f32 1e-07, %v73_v50 }
  0xcf   :  { %v161_v16 = vmul.f32 %v160_v40, %v150_v34 }
  0xd0   :  { %v131_v29 = vadd.f32 %v130_v57, %v120_v19  ;;  %v1129_v39 = vrot.slane %v74_v18, 10 }
  0xd1   :  { %v162_v6 = vadd.f32 %v161_v16, %v150_v34 }
  0xd2   :  { %v132_v7 = vmul.f32 %v131_v29, %v104_v55  ;;  %1241 = vrcp.f32 %v1129_v39 }
  0xd3   :  { %v163_v21 = vadd.f32 %v162_v6, %v152_v24 }
  0xd5   :  { %v164_v35 = vmul.f32 %v163_v21, %v136_v32 }
  0xd7   :  { %v165_v59 = vsub.f32 %v132_v7, %v164_v35 }
  0xd9   :  { %v166_v22 = vmul.f32 %v165_v59, %v165_v59 }
  0xdb   :  { %v167_v10 = vmul.f32 0.40528473, %v166_v22 }
  0xdd   :  { %v168_v26 = vsub.f32 %v167_v10, %v63_v4 }
  0xdf   :  { %v169_v62 = vadd.f32 1.0000001, %v168_v26  ;;  %v1242_v61 = vpop.eup %1241 }
  0xe0   :  { %v177_v44 = vmul.f32 %v1242_v61, %v88_v5 }
  0xe1   :  { %1243 = vrcp.f32 %v169_v62 }
  0xee   :  { %v1244_v31 = vpop.eup %1243 }
  0xef   :  { %v171_v38 = vmul.f32 %v1244_v31, %v167_v10 }
  0xf1   :  { %v178_v28 = vmul.f32 %v171_v38, %v167_v10 }
  0xf3   :  { %v1130_v52 = vrot.slane %v178_v28, 10 }
  0xf5   :  { %v183_v45 = vadd.f32 %v1130_v52, %v177_v44 }
  0xf7   :  { %v185_v37 = vrot.slane %v183_v45, 6 }
  0xf9   :  { %v187_v34 = vsub.f32 %v63_v4, %v185_v37 }
  0xfb   :  { %v188_v2 = vsub.f32 1.0, %v187_v34 }
  0xfd   :  { %v196_v54 = vrot.slane %v188_v2, %v2040_v12 }
  0xff   :  { %v203_v42 = vrot.slane %v196_v54, %v2040_v12 }
 0x101   :  { %v204_v14 = vcombine.high %v203_v42, %v203_v42 }
 0x103   :  { %v206_v20 = vmul.f32 %v204_v14, %v2052_v1 }
 0x105   :  { %v211_v30 = vrot.slane %v206_v20, %v1446_v9  ;;  %v215_v46 = vrot.slane %v206_v20, %v1486_v49 }
 0x107   :  { %v219_v53 = vsel %vm218_vm0, %v211_v30, 0.0  ;;  %v220_v23 = vsel %vm218_vm0, %v215_v46, 0.0 }
 0x108   :  { %v221_v8 = vadd.f32 %v220_v23, %v219_v53 }
 0x10a   :  { %222 = vadd.xlane.f32.xlu0 %v221_v8 }
 0x14a   :  { %v1084_v47 = vpop.xlane.xlu0 %1083 }
 0x14b   :  { %v1085_v41 = vmul.f32 0.25, %v1084_v47 }
 0x14d   :  { %1087 = vst [vmem:[#allocation4] sm:$0x1] %v1085_v41 }
 0x14e   :  { %1257 = shalt.err (!%p1254_p4)
}
 0x14f   :  { %1107 = dma.vmem_to_hbm [thread:$0]  %s1105_s26, 16, %s2122_s6, [#allocation5]  }
 0x150   :  { %s1297_s7 = smov [#allocation2]  }
 0x151   :  { %s1094_s8 = sshll.u32 %s1297_s7, 4  ;;  %s1095_s8 = int_to_ptr.vmem [resolvable:$true] %s1094_s8 }
 0x152   :  { %s1266_s9 = scalar_lea.vmem %s1095_s8, 16  ;;  %s1270_s10 = scalar_lea.vmem %s1095_s8, 32 }
 0x153   :  { %p1267_p5 = scmp.ne.s32.totalorder %s1095_s8, %s1266_s9  ;;  %p1271_p6 = scmp.lt.s32.totalorder %s1095_s8, %s1095_s8 }
 0x154   :  { %p1272_p7 = scmp.lt.s32.totalorder %s1270_s10, %s1266_s9 }
 0x156   :  { %p1273_p8 = por %p1272_p7, %p1271_p6 }
 0x158   :  { %p1274_p9 = pnand %p1273_p8, %p1267_p5 }
 0x193   :  { %v223_v9 = vpop.xlane.xlu0 %222 }
 0x194   :  { %1086 = vst [vmem:[#allocation2] sm:$0x1] %v223_v9 }
 0x195   :  { %1277 = shalt.err (!%p1274_p9)
}
 0x196   :  { %1097 = dma.vmem_to_hbm [thread:$0]  %s1095_s8, 16, %s2121_s5, [#allocation3]  }
 0x197   :  { %1286 = dma.done.wait [#allocation3], 16  }
 0x198   :  { %1287 = vsyncadd [#allocation3], 4294967280 }
 0x199   :  { %1288 = dma.done.wait [#allocation5], 16  }
 0x19a   :  { %1289 = vsyncadd [#allocation5], 4294967280 }
 0x19b   :  { %1114 = vsyncpa [#allocation3], 1 }
 0x19c   :  { %1115 = vsyncpa [#allocation5], 1 }

</bundles_post_ra>
